<compile_context>
chip_gen: v7x
topology: tpu7x:2x2x1
jax: 0.10.0
libtpu: 0.0.40
codegen_flags: <defaults>
</compile_context>

<pallas_src>
import functools
import math

import jax
import jax.numpy as jnp
from jax import lax
from jax.experimental import pallas as pl
from jax.experimental.pallas import tpu as pltpu


# ----------------------------------------------------------------------------
# Pallas kernel: one grid step == rows_per_block image rows of steps_x LSTM
# time steps each.
# ----------------------------------------------------------------------------
def _make_lstm2d_kernel(steps_x: int, rows_per_block: int, hidden: int,
                        batch: int):
    H = hidden
    G = 4 * H
    unroll_cols = steps_x <= 32        # raise the old threshold of 8
    unroll_rows = rows_per_block <= 8

    def kernel(z_ref, wh_ref, wp_ref, out_ref, ring_sc, zr_sc, h_sc, c_sc):
        blk = pl.program_id(0)

        # First grid step: zero the recurrent state and the look-back ring
        # (the first image row looks back at zeros, as in the reference).
        @pl.when(blk == 0)
        def _():
            ring_sc[...] = jnp.zeros_like(ring_sc)
            h_sc[...] = jnp.zeros_like(h_sc)
            c_sc[...] = jnp.zeros_like(c_sc)

        wh = wh_ref[...]   # (H, 4H) hidden-state recurrent weight
        wp = wp_ref[...]   # (H, 4H) 2-D look-back weight

        # Hoisted per-lane selectors: lanes [2H, 3H) are the "g" gate (tanh);
        # the other gates are sigmoid, computed as 0.5*tanh(0.5*x) + 0.5 so a
        # single full-vreg tanh covers all four gates.
        lane = lax.broadcasted_iota(jnp.int32, (batch, G), 1)
        is_g = jnp.logical_and(lane >= 2 * H, lane < 3 * H)
        gscale = jnp.where(is_g, 1.0, 0.5).astype(jnp.float32)
        gbias = jnp.where(is_g, 0.0, 0.5).astype(jnp.float32)

        def prep_col(r_off, j):
            # Look-back projection for column j: depends only on the previous
            # (already complete) row -> off the serial dependency chain.
            zr_sc[j] = z_ref[r_off + j] + jnp.dot(
                ring_sc[j], wp, preferred_element_type=jnp.float32)

        def col_step(j, h, c):
            # Serial-critical work: one small K=H MXU dot + one tanh chain.
            gates = zr_sc[j] + jnp.dot(h, wh,
                                       preferred_element_type=jnp.float32)
            act = jnp.tanh(gates * gscale) * gscale + gbias   # one EUP pass
            i_g = act[:, 0 * H:1 * H]
            f_g = act[:, 1 * H:2 * H]
            g_g = act[:, 2 * H:3 * H]
            o_g = act[:, 3 * H:4 * H]
            c_new = f_g * c + i_g * g_g
            h_new = o_g * jnp.tanh(c_new)
            # This column's output is the next row's look-back source and is
            # staged for the bulk per-row writeback (read-before-write above).
            ring_sc[j] = h_new
            return h_new, c_new

        def row_body(r, h, c):
            r_off = r * steps_x
            if unroll_cols:
                for j in range(steps_x):
                    prep_col(r_off, j)
                for j in range(steps_x):
                    h, c = col_step(j, h, c)
            else:
                @pl.loop(0, steps_x)
                def _(j):
                    prep_col(r_off, j)

                def body(j, hc):
                    return col_step(j, *hc)

                h, c = lax.fori_loop(0, steps_x, body, (h, c), unroll=4)
            # Bulk per-row writeback: ring now holds this whole row's outputs.
            out_ref[pl.ds(r_off, steps_x), :, :] = ring_sc[...]
            return h, c

        # h / c live in vregs for the whole grid step.
        h = h_sc[...]
        c = c_sc[...]
        if unroll_rows:
            for r in range(rows_per_block):
                h, c = row_body(r, h, c)
        else:
            def rbody(r, hc):
                return row_body(r, *hc)

            h, c = lax.fori_loop(0, rows_per_block, rbody, (h, c))
        # Persist across grid steps: one store per grid step, not per time step.
        h_sc[...] = h
        c_sc[...] = c

    return kernel


def _pick_rows_per_block(steps_x, steps_y, batch, hidden,
                         vmem_budget_bytes=4 * 1024 * 1024):
    """Largest divisor of steps_y whose double-buffered Z + out blocks fit a
    modest VMEM budget (safe for v7x's smaller VMEM)."""
    per_row = steps_x * batch * (4 * hidden + hidden) * 4 * 2  # f32, 2 buffers
    best = 1
    for r in range(1, steps_y + 1):
        if steps_y % r == 0 and r * per_row <= vmem_budget_bytes:
            best = r
    return best


def _lstm2d_recurrence_pallas(z_steps, wh_t, wp_t, steps_x, steps_y, hidden):
    """z_steps: (T, B, 4H) precomputed input projection -> (T, B, H) outputs."""
    T, B, G = z_steps.shape
    assert G == 4 * hidden and T == steps_x * steps_y
    rows_per_block = _pick_rows_per_block(steps_x, steps_y, B, hidden)
    blk_t = rows_per_block * steps_x
    kernel = _make_lstm2d_kernel(steps_x, rows_per_block, hidden, B)
    return pl.pallas_call(
        kernel,
        out_shape=jax.ShapeDtypeStruct((T, B, hidden), jnp.float32),
        grid=(steps_y // rows_per_block,),
        in_specs=[
            # A block of rows of precomputed gate pre-activations per grid step.
            pl.BlockSpec((blk_t, B, G), lambda rb: (rb, 0, 0)),
            # Grid-invariant recurrent weights (hidden / look-back), transposed.
            pl.BlockSpec((hidden, G), lambda rb: (0, 0)),
            pl.BlockSpec((hidden, G), lambda rb: (0, 0)),
        ],
        out_specs=pl.BlockSpec((blk_t, B, hidden), lambda rb: (rb, 0, 0)),
        scratch_shapes=[
            pltpu.VMEM((steps_x, B, hidden), jnp.float32),  # look-back ring
            pltpu.VMEM((steps_x, B, G), jnp.float32),       # row Z (+ look-back)
            pltpu.VMEM((B, hidden), jnp.float32),           # h (cross-block)
            pltpu.VMEM((B, hidden), jnp.float32),           # c (cross-block)
        ],
        compiler_params=pltpu.CompilerParams(
            # Must stay "arbitrary": state persists across the serial grid.
            dimension_semantics=("arbitrary",)),
    )(z_steps, wh_t, wp_t)


# ----------------------------------------------------------------------------
# Glue: faithful reimplementation of LstmIterator + Lstm2D.forward plumbing.
# ----------------------------------------------------------------------------
def _extract_steps(batch, size_x, size_y):
    """Replicates LstmIterator via one pad + reshape + transpose.

    NOTE: faithful to the reference's indexing quirk (size_x applied to the
    HEIGHT slice, size_y to the WIDTH slice).  The PyTorch module is only
    self-consistent when size_x == size_y, which this reproduces exactly.
    """
    B, C, Hh, Ww = batch.shape
    pad_w = (size_x - Ww % size_x) % size_x   # WIDTH padded to multiple of size_x
    pad_h = (size_y - Hh % size_y) % size_y   # HEIGHT padded to multiple of size_y
    padded = jnp.pad(batch, ((0, 0), (0, 0), (0, pad_h), (0, pad_w)))
    Hp, Wp = padded.shape[2], padded.shape[3]
    steps_x = Wp // size_x
    steps_y = Hp // size_y

    # Region actually touched by the (quirky) iteration pattern.
    need_h = steps_y * size_x
    need_w = steps_x * size_y
    grid = padded
    if need_h != Hp or need_w != Wp:
        grid = jnp.pad(padded, ((0, 0), (0, 0),
                                (0, max(need_h - Hp, 0)),
                                (0, max(need_w - Wp, 0))))
        grid = grid[:, :, :need_h, :need_w]

    # space-to-depth: (B, C, steps_y, size_x, steps_x, size_y)
    g = grid.reshape(B, C, steps_y, size_x, steps_x, size_y)
    # -> (steps_y, steps_x, B, C, size_x, size_y) -> (T, B, C*size_x*size_y)
    g = jnp.transpose(g, (2, 4, 0, 1, 3, 5))
    x_steps = g.reshape(steps_y * steps_x, B, C * size_x * size_y)
    return x_steps, steps_x, steps_y


def lstm2d_forward(batch, params, num_cells, neib_shape):
    size_x, size_y = neib_shape
    B = batch.shape[0]
    x_steps, steps_x, steps_y = _extract_steps(batch, size_x, size_y)
    T, _, d_in = x_steps.shape
    H = num_cells

    w_ih, w_hh, b_ih, b_hh = params  # PyTorch nn.LSTM parameter layout
    input_size = d_in
    wx_t = jnp.transpose(w_ih[:, :input_size])        # (D_in, 4H) input part
    wp_t = jnp.transpose(w_ih[:, input_size:])        # (H,    4H) look-back part
    wh_t = jnp.transpose(w_hh)                        # (H,    4H) hidden part
    b_row = (b_ih + b_hh).reshape(1, 4 * H)           # (1,    4H)

    # Hoisted input projection: one big, well-shaped MXU matmul in XLA.
    z = (x_steps.reshape(T * B, d_in) @ wx_t + b_row).reshape(T, B, 4 * H)
    z = z.astype(jnp.float32)

    outs = _lstm2d_recurrence_pallas(z,
                                     wh_t.astype(jnp.float32),
                                     wp_t.astype(jnp.float32),
                                     steps_x, steps_y, H)          # (T, B, H)

    # to_image: cat -> permute(1,0,2) -> raw reshape to (B, num_cells, sy, sx)
    permuted = jnp.transpose(outs, (1, 0, 2))                      # (B, T, H)
    return permuted.reshape(B, num_cells, steps_y, steps_x)


# ----------------------------------------------------------------------------
# Pure-JAX reference (same math, no Pallas) for verification.
# ----------------------------------------------------------------------------
def lstm2d_forward_ref(batch, params, num_cells, neib_shape):
    size_x, size_y = neib_shape
    B = batch.shape[0]
    x_steps, steps_x, steps_y = _extract_steps(batch, size_x, size_y)
    T, _, d_in = x_steps.shape
    w_ih, w_hh, b_ih, b_hh = params
    H = num_cells
    h = jnp.zeros((B, H), jnp.float32)
    c = jnp.zeros((B, H), jnp.float32)
    outs = []
    for t in range(T):
        prev2 = outs[t - steps_x] if t >= steps_x else jnp.zeros((B, H), jnp.float32)
        inp = jnp.concatenate([x_steps[t], prev2], axis=1)      # (B, D_in + H)
        gates = inp @ w_ih.T + h @ w_hh.T + b_ih + b_hh
        i_g = jax.nn.sigmoid(gates[:, 0 * H:1 * H])
        f_g = jax.nn.sigmoid(gates[:, 1 * H:2 * H])
        g_g = jnp.tanh(gates[:, 2 * H:3 * H])
        o_g = jax.nn.sigmoid(gates[:, 3 * H:4 * H])
        c = f_g * c + i_g * g_g
        h = o_g * jnp.tanh(c)
        outs.append(h)
    outs = jnp.stack(outs, axis=0)                              # (T, B, H)
    permuted = jnp.transpose(outs, (1, 0, 2))
    return permuted.reshape(B, num_cells, steps_y, steps_x)


# ----------------------------------------------------------------------------
if __name__ == "__main__":
    key = jax.random.PRNGKey(0)
    k_img, k_wih, k_whh, k_bih, k_bhh = jax.random.split(key, 5)

    # Small shapes consistent with the module's forward.
    B, C, H_IMG, W_IMG = 2, 3, 16, 16
    neib_shape = (4, 4)                               # (size_x, size_y)
    num_cells = 32
    input_size = C * neib_shape[0] * neib_shape[1]    # 48

    batch = jax.random.normal(k_img, (B, C, H_IMG, W_IMG), jnp.float32)

    # Deterministic synthetic nn.LSTM(input_size + num_cells, num_cells) params
    # (PyTorch default init: U(-1/sqrt(H), 1/sqrt(H))).
    scale = 1.0 / math.sqrt(num_cells)
    d_total = input_size + num_cells
    w_ih = jax.random.uniform(k_wih, (4 * num_cells, d_total), jnp.float32,
                              minval=-scale, maxval=scale)
    w_hh = jax.random.uniform(k_whh, (4 * num_cells, num_cells), jnp.float32,
                              minval=-scale, maxval=scale)
    b_ih = jax.random.uniform(k_bih, (4 * num_cells,), jnp.float32,
                              minval=-scale, maxval=scale)
    b_hh = jax.random.uniform(k_bhh, (4 * num_cells,), jnp.float32,
                              minval=-scale, maxval=scale)
    params = (w_ih, w_hh, b_ih, b_hh)

    run = jax.jit(functools.partial(
        lstm2d_forward, num_cells=num_cells, neib_shape=neib_shape))
    out = run(batch, params)
    out = jax.block_until_ready(out)

    ref = lstm2d_forward_ref(batch, params, num_cells, neib_shape)
    ref = jax.block_until_ready(ref)

    assert out.shape == (B, num_cells, 4, 4), out.shape
    assert jnp.allclose(out, ref, atol=1e-4, rtol=1e-4), \
        float(jnp.max(jnp.abs(out - ref)))

    print("KERNEL_OK")
</pallas_src>

<mosaic_0001>
module attributes {stable_mosaic.version = 11 : i64} {
  func.func @kernel(%arg0: i32, %arg1: memref<16x2x128xf32, #tpu.memory_space<vmem>>, %arg2: memref<32x128xf32, #tpu.memory_space<vmem>>, %arg3: memref<32x128xf32, #tpu.memory_space<vmem>>, %arg4: memref<16x2x32xf32, #tpu.memory_space<vmem>>, %arg5: memref<4x2x32xf32, #tpu.memory_space<vmem>>, %arg6: memref<4x2x128xf32, #tpu.memory_space<vmem>>, %arg7: memref<2x32xf32, #tpu.memory_space<vmem>>, %arg8: memref<2x32xf32, #tpu.memory_space<vmem>>) attributes {dimension_semantics = [#tpu.dimension_semantics<arbitrary>], iteration_bounds = array<i64: 1>, scalar_prefetch = 0 : i64, scratch_operands = 4 : i64, tpu.core_type = #tpu.core_type<tc>, window_params = [{transform_indices = @transform_0, window_bounds = array<i64: 16, 2, 128>}, {pipeline_mode = #tpu.pipeline_mode<synchronous>, transform_indices = @transform_1, window_bounds = array<i64: 32, 128>}, {pipeline_mode = #tpu.pipeline_mode<synchronous>, transform_indices = @transform_2, window_bounds = array<i64: 32, 128>}, {transform_indices = @transform_3, window_bounds = array<i64: 16, 2, 32>}]} {
    %c0_i32 = arith.constant 0 : i32
    %0 = arith.cmpi eq, %arg0, %c0_i32 : i32
    %1 = arith.extui %0 : i1 to i32
    %c0_i32_0 = arith.constant 0 : i32
    %2 = arith.cmpi ne, %1, %c0_i32_0 : i32
    scf.if %2 {
      %cst_296 = arith.constant 0.000000e+00 : f32
      %493 = vector.broadcast %cst_296 : f32 to vector<4x2x32xf32>
      %c0_297 = arith.constant 0 : index
      %c0_298 = arith.constant 0 : index
      %c0_299 = arith.constant 0 : index
      %494 = vector.load %arg5[%c0_297, %c0_298, %c0_299] : memref<4x2x32xf32, #tpu.memory_space<vmem>>, vector<4x2x32xf32>
      tpu.vector_store %arg5[%c0_297, %c0_298, %c0_299], %493 {strides = array<i32>} : memref<4x2x32xf32, #tpu.memory_space<vmem>>, vector<4x2x32xf32>,
      %cst_300 = arith.constant 0.000000e+00 : f32
      %495 = vector.broadcast %cst_300 : f32 to vector<2x32xf32>
      %c0_301 = arith.constant 0 : index
      %c0_302 = arith.constant 0 : index
      %496 = vector.load %arg7[%c0_301, %c0_302] : memref<2x32xf32, #tpu.memory_space<vmem>>, vector<2x32xf32>
      tpu.vector_store %arg7[%c0_301, %c0_302], %495 {strides = array<i32>} : memref<2x32xf32, #tpu.memory_space<vmem>>, vector<2x32xf32>,
      %cst_303 = arith.constant 0.000000e+00 : f32
      %497 = vector.broadcast %cst_303 : f32 to vector<2x32xf32>
      %c0_304 = arith.constant 0 : index
      %c0_305 = arith.constant 0 : index
      %498 = vector.load %arg8[%c0_304, %c0_305] : memref<2x32xf32, #tpu.memory_space<vmem>>, vector<2x32xf32>
      tpu.vector_store %arg8[%c0_304, %c0_305], %497 {strides = array<i32>} : memref<2x32xf32, #tpu.memory_space<vmem>>, vector<2x32xf32>,
    } else {
    }
    %c0 = arith.constant 0 : index
    %c0_1 = arith.constant 0 : index
    %3 = vector.load %arg2[%c0, %c0_1] : memref<32x128xf32, #tpu.memory_space<vmem>>, vector<32x128xf32>
    %c0_2 = arith.constant 0 : index
    %c0_3 = arith.constant 0 : index
    %4 = vector.load %arg3[%c0_2, %c0_3] : memref<32x128xf32, #tpu.memory_space<vmem>>, vector<32x128xf32>
    %5 = tpu.iota {dimensions = array<i32: 1>} : vector<2x128xi32>
    %c64_i32 = arith.constant 64 : i32
    %6 = vector.broadcast %c64_i32 : i32 to vector<2x128xi32>
    %7 = arith.cmpi sge, %5, %6 : vector<2x128xi32>
    %c96_i32 = arith.constant 96 : i32
    %8 = vector.broadcast %c96_i32 : i32 to vector<2x128xi32>
    %9 = arith.cmpi slt, %5, %8 : vector<2x128xi32>
    %10 = arith.andi %7, %9 : vector<2x128xi1>
    %cst = arith.constant 1.000000e+00 : f32
    %cst_4 = arith.constant 5.000000e-01 : f32
    %11 = vector.broadcast %cst : f32 to vector<2x128xf32>
    %12 = vector.broadcast %cst_4 : f32 to vector<2x128xf32>
    %13 = arith.select %10, %11, %12 : vector<2x128xi1>, vector<2x128xf32>
    %cst_5 = arith.constant 0.000000e+00 : f32
    %cst_6 = arith.constant 5.000000e-01 : f32
    %14 = vector.broadcast %cst_5 : f32 to vector<2x128xf32>
    %15 = vector.broadcast %cst_6 : f32 to vector<2x128xf32>
    %16 = arith.select %10, %14, %15 : vector<2x128xi1>, vector<2x128xf32>
    %c0_7 = arith.constant 0 : index
    %c0_8 = arith.constant 0 : index
    %17 = vector.load %arg7[%c0_7, %c0_8] : memref<2x32xf32, #tpu.memory_space<vmem>>, vector<2x32xf32>
    %c0_9 = arith.constant 0 : index
    %c0_10 = arith.constant 0 : index
    %18 = vector.load %arg8[%c0_9, %c0_10] : memref<2x32xf32, #tpu.memory_space<vmem>>, vector<2x32xf32>
    %c0_11 = arith.constant 0 : index
    %c0_12 = arith.constant 0 : index
    %c0_13 = arith.constant 0 : index
    %19 = vector.load %arg1[%c0_11, %c0_12, %c0_13] : memref<16x2x128xf32, #tpu.memory_space<vmem>>, vector<1x2x128xf32>
    %20 = vector.shape_cast %19 : vector<1x2x128xf32> to vector<2x128xf32>
    %c0_14 = arith.constant 0 : index
    %c0_15 = arith.constant 0 : index
    %c0_16 = arith.constant 0 : index
    %21 = vector.load %arg5[%c0_14, %c0_15, %c0_16] : memref<4x2x32xf32, #tpu.memory_space<vmem>>, vector<1x2x32xf32>
    %22 = vector.shape_cast %21 : vector<1x2x32xf32> to vector<2x32xf32>
    %cst_17 = arith.constant dense<0.000000e+00> : vector<2x128xf32>
    %23 = tpu.matmul %22, %4, %cst_17 {dimension_numbers = #tpu.dot_dimension_numbers<[1], [0], [0], [1], [0, 0, 1, 1], [], []>} : vector<2x32xf32>, vector<32x128xf32>, vector<2x128xf32> -> vector<2x128xf32>
    %24 = arith.addf %20, %23 : vector<2x128xf32>
    %c0_18 = arith.constant 0 : index
    %c0_19 = arith.constant 0 : index
    %c0_20 = arith.constant 0 : index
    %25 = vector.load %arg6[%c0_18, %c0_19, %c0_20] : memref<4x2x128xf32, #tpu.memory_space<vmem>>, vector<1x2x128xf32>
    %26 = vector.shape_cast %25 : vector<1x2x128xf32> to vector<2x128xf32>
    %27 = vector.shape_cast %24 : vector<2x128xf32> to vector<1x2x128xf32>
    tpu.vector_store %arg6[%c0_18, %c0_19, %c0_20], %27 {strides = array<i32>} : memref<4x2x128xf32, #tpu.memory_space<vmem>>, vector<1x2x128xf32>,
    %c1 = arith.constant 1 : index
    %c0_21 = arith.constant 0 : index
    %c0_22 = arith.constant 0 : index
    %28 = vector.load %arg1[%c1, %c0_21, %c0_22] : memref<16x2x128xf32, #tpu.memory_space<vmem>>, vector<1x2x128xf32>
    %29 = vector.shape_cast %28 : vector<1x2x128xf32> to vector<2x128xf32>
    %c1_23 = arith.constant 1 : index
    %c0_24 = arith.constant 0 : index
    %c0_25 = arith.constant 0 : index
    %30 = vector.load %arg5[%c1_23, %c0_24, %c0_25] : memref<4x2x32xf32, #tpu.memory_space<vmem>>, vector<1x2x32xf32>
    %31 = vector.shape_cast %30 : vector<1x2x32xf32> to vector<2x32xf32>
    %cst_26 = arith.constant dense<0.000000e+00> : vector<2x128xf32>
    %32 = tpu.matmul %31, %4, %cst_26 {dimension_numbers = #tpu.dot_dimension_numbers<[1], [0], [0], [1], [0, 0, 1, 1], [], []>} : vector<2x32xf32>, vector<32x128xf32>, vector<2x128xf32> -> vector<2x128xf32>
    %33 = arith.addf %29, %32 : vector<2x128xf32>
    %c1_27 = arith.constant 1 : index
    %c0_28 = arith.constant 0 : index
    %c0_29 = arith.constant 0 : index
    %34 = vector.load %arg6[%c1_27, %c0_28, %c0_29] : memref<4x2x128xf32, #tpu.memory_space<vmem>>, vector<1x2x128xf32>
    %35 = vector.shape_cast %34 : vector<1x2x128xf32> to vector<2x128xf32>
    %36 = vector.shape_cast %33 : vector<2x128xf32> to vector<1x2x128xf32>
    tpu.vector_store %arg6[%c1_27, %c0_28, %c0_29], %36 {strides = array<i32>} : memref<4x2x128xf32, #tpu.memory_space<vmem>>, vector<1x2x128xf32>,
    %c2 = arith.constant 2 : index
    %c0_30 = arith.constant 0 : index
    %c0_31 = arith.constant 0 : index
    %37 = vector.load %arg1[%c2, %c0_30, %c0_31] : memref<16x2x128xf32, #tpu.memory_space<vmem>>, vector<1x2x128xf32>
    %38 = vector.shape_cast %37 : vector<1x2x128xf32> to vector<2x128xf32>
    %c2_32 = arith.constant 2 : index
    %c0_33 = arith.constant 0 : index
    %c0_34 = arith.constant 0 : index
    %39 = vector.load %arg5[%c2_32, %c0_33, %c0_34] : memref<4x2x32xf32, #tpu.memory_space<vmem>>, vector<1x2x32xf32>
    %40 = vector.shape_cast %39 : vector<1x2x32xf32> to vector<2x32xf32>
    %cst_35 = arith.constant dense<0.000000e+00> : vector<2x128xf32>
    %41 = tpu.matmul %40, %4, %cst_35 {dimension_numbers = #tpu.dot_dimension_numbers<[1], [0], [0], [1], [0, 0, 1, 1], [], []>} : vector<2x32xf32>, vector<32x128xf32>, vector<2x128xf32> -> vector<2x128xf32>
    %42 = arith.addf %38, %41 : vector<2x128xf32>
    %c2_36 = arith.constant 2 : index
    %c0_37 = arith.constant 0 : index
    %c0_38 = arith.constant 0 : index
    %43 = vector.load %arg6[%c2_36, %c0_37, %c0_38] : memref<4x2x128xf32, #tpu.memory_space<vmem>>, vector<1x2x128xf32>
    %44 = vector.shape_cast %43 : vector<1x2x128xf32> to vector<2x128xf32>
    %45 = vector.shape_cast %42 : vector<2x128xf32> to vector<1x2x128xf32>
    tpu.vector_store %arg6[%c2_36, %c0_37, %c0_38], %45 {strides = array<i32>} : memref<4x2x128xf32, #tpu.memory_space<vmem>>, vector<1x2x128xf32>,
    %c3 = arith.constant 3 : index
    %c0_39 = arith.constant 0 : index
    %c0_40 = arith.constant 0 : index
    %46 = vector.load %arg1[%c3, %c0_39, %c0_40] : memref<16x2x128xf32, #tpu.memory_space<vmem>>, vector<1x2x128xf32>
    %47 = vector.shape_cast %46 : vector<1x2x128xf32> to vector<2x128xf32>
    %c3_41 = arith.constant 3 : index
    %c0_42 = arith.constant 0 : index
    %c0_43 = arith.constant 0 : index
    %48 = vector.load %arg5[%c3_41, %c0_42, %c0_43] : memref<4x2x32xf32, #tpu.memory_space<vmem>>, vector<1x2x32xf32>
    %49 = vector.shape_cast %48 : vector<1x2x32xf32> to vector<2x32xf32>
    %cst_44 = arith.constant dense<0.000000e+00> : vector<2x128xf32>
    %50 = tpu.matmul %49, %4, %cst_44 {dimension_numbers = #tpu.dot_dimension_numbers<[1], [0], [0], [1], [0, 0, 1, 1], [], []>} : vector<2x32xf32>, vector<32x128xf32>, vector<2x128xf32> -> vector<2x128xf32>
    %51 = arith.addf %47, %50 : vector<2x128xf32>
    %c3_45 = arith.constant 3 : index
    %c0_46 = arith.constant 0 : index
    %c0_47 = arith.constant 0 : index
    %52 = vector.load %arg6[%c3_45, %c0_46, %c0_47] : memref<4x2x128xf32, #tpu.memory_space<vmem>>, vector<1x2x128xf32>
    %53 = vector.shape_cast %52 : vector<1x2x128xf32> to vector<2x128xf32>
    %54 = vector.shape_cast %51 : vector<2x128xf32> to vector<1x2x128xf32>
    tpu.vector_store %arg6[%c3_45, %c0_46, %c0_47], %54 {strides = array<i32>} : memref<4x2x128xf32, #tpu.memory_space<vmem>>, vector<1x2x128xf32>,
    %c0_48 = arith.constant 0 : index
    %c0_49 = arith.constant 0 : index
    %c0_50 = arith.constant 0 : index
    %55 = vector.load %arg6[%c0_48, %c0_49, %c0_50] : memref<4x2x128xf32, #tpu.memory_space<vmem>>, vector<1x2x128xf32>
    %56 = vector.shape_cast %55 : vector<1x2x128xf32> to vector<2x128xf32>
    %cst_51 = arith.constant dense<0.000000e+00> : vector<2x128xf32>
    %57 = tpu.matmul %17, %3, %cst_51 {dimension_numbers = #tpu.dot_dimension_numbers<[1], [0], [0], [1], [0, 0, 1, 1], [], []>} : vector<2x32xf32>, vector<32x128xf32>, vector<2x128xf32> -> vector<2x128xf32>
    %58 = arith.addf %56, %57 : vector<2x128xf32>
    %59 = arith.mulf %58, %13 : vector<2x128xf32>
    %60 = math.tanh %59 : vector<2x128xf32>
    %61 = arith.mulf %60, %13 : vector<2x128xf32>
    %62 = arith.addf %61, %16 : vector<2x128xf32>
    %63 = vector.extract_strided_slice %62 {offsets = [0, 0], sizes = [2, 32], strides = [1, 1]} : vector<2x128xf32> to vector<2x32xf32>
    %64 = vector.extract_strided_slice %62 {offsets = [0, 32], sizes = [2, 32], strides = [1, 1]} : vector<2x128xf32> to vector<2x32xf32>
    %65 = vector.extract_strided_slice %62 {offsets = [0, 64], sizes = [2, 32], strides = [1, 1]} : vector<2x128xf32> to vector<2x32xf32>
    %66 = vector.extract_strided_slice %62 {offsets = [0, 96], sizes = [2, 32], strides = [1, 1]} : vector<2x128xf32> to vector<2x32xf32>
    %67 = arith.mulf %64, %18 : vector<2x32xf32>
    %68 = arith.mulf %63, %65 : vector<2x32xf32>
    %69 = arith.addf %67, %68 : vector<2x32xf32>
    %70 = math.tanh %69 : vector<2x32xf32>
    %71 = arith.mulf %66, %70 : vector<2x32xf32>
    %c0_52 = arith.constant 0 : index
    %c0_53 = arith.constant 0 : index
    %c0_54 = arith.constant 0 : index
    %72 = vector.load %arg5[%c0_52, %c0_53, %c0_54] : memref<4x2x32xf32, #tpu.memory_space<vmem>>, vector<1x2x32xf32>
    %73 = vector.shape_cast %72 : vector<1x2x32xf32> to vector<2x32xf32>
    %74 = vector.shape_cast %71 : vector<2x32xf32> to vector<1x2x32xf32>
    tpu.vector_store %arg5[%c0_52, %c0_53, %c0_54], %74 {strides = array<i32>} : memref<4x2x32xf32, #tpu.memory_space<vmem>>, vector<1x2x32xf32>,
    %c1_55 = arith.constant 1 : index
    %c0_56 = arith.constant 0 : index
    %c0_57 = arith.constant 0 : index
    %75 = vector.load %arg6[%c1_55, %c0_56, %c0_57] : memref<4x2x128xf32, #tpu.memory_space<vmem>>, vector<1x2x128xf32>
    %76 = vector.shape_cast %75 : vector<1x2x128xf32> to vector<2x128xf32>
    %cst_58 = arith.constant dense<0.000000e+00> : vector<2x128xf32>
    %77 = tpu.matmul %71, %3, %cst_58 {dimension_numbers = #tpu.dot_dimension_numbers<[1], [0], [0], [1], [0, 0, 1, 1], [], []>} : vector<2x32xf32>, vector<32x128xf32>, vector<2x128xf32> -> vector<2x128xf32>
    %78 = arith.addf %76, %77 : vector<2x128xf32>
    %79 = arith.mulf %78, %13 : vector<2x128xf32>
    %80 = math.tanh %79 : vector<2x128xf32>
    %81 = arith.mulf %80, %13 : vector<2x128xf32>
    %82 = arith.addf %81, %16 : vector<2x128xf32>
    %83 = vector.extract_strided_slice %82 {offsets = [0, 0], sizes = [2, 32], strides = [1, 1]} : vector<2x128xf32> to vector<2x32xf32>
    %84 = vector.extract_strided_slice %82 {offsets = [0, 32], sizes = [2, 32], strides = [1, 1]} : vector<2x128xf32> to vector<2x32xf32>
    %85 = vector.extract_strided_slice %82 {offsets = [0, 64], sizes = [2, 32], strides = [1, 1]} : vector<2x128xf32> to vector<2x32xf32>
    %86 = vector.extract_strided_slice %82 {offsets = [0, 96], sizes = [2, 32], strides = [1, 1]} : vector<2x128xf32> to vector<2x32xf32>
    %87 = arith.mulf %84, %69 : vector<2x32xf32>
    %88 = arith.mulf %83, %85 : vector<2x32xf32>
    %89 = arith.addf %87, %88 : vector<2x32xf32>
    %90 = math.tanh %89 : vector<2x32xf32>
    %91 = arith.mulf %86, %90 : vector<2x32xf32>
    %c1_59 = arith.constant 1 : index
    %c0_60 = arith.constant 0 : index
    %c0_61 = arith.constant 0 : index
    %92 = vector.load %arg5[%c1_59, %c0_60, %c0_61] : memref<4x2x32xf32, #tpu.memory_space<vmem>>, vector<1x2x32xf32>
    %93 = vector.shape_cast %92 : vector<1x2x32xf32> to vector<2x32xf32>
    %94 = vector.shape_cast %91 : vector<2x32xf32> to vector<1x2x32xf32>
    tpu.vector_store %arg5[%c1_59, %c0_60, %c0_61], %94 {strides = array<i32>} : memref<4x2x32xf32, #tpu.memory_space<vmem>>, vector<1x2x32xf32>,
    %c2_62 = arith.constant 2 : index
    %c0_63 = arith.constant 0 : index
    %c0_64 = arith.constant 0 : index
    %95 = vector.load %arg6[%c2_62, %c0_63, %c0_64] : memref<4x2x128xf32, #tpu.memory_space<vmem>>, vector<1x2x128xf32>
    %96 = vector.shape_cast %95 : vector<1x2x128xf32> to vector<2x128xf32>
    %cst_65 = arith.constant dense<0.000000e+00> : vector<2x128xf32>
    %97 = tpu.matmul %91, %3, %cst_65 {dimension_numbers = #tpu.dot_dimension_numbers<[1], [0], [0], [1], [0, 0, 1, 1], [], []>} : vector<2x32xf32>, vector<32x128xf32>, vector<2x128xf32> -> vector<2x128xf32>
    %98 = arith.addf %96, %97 : vector<2x128xf32>
    %99 = arith.mulf %98, %13 : vector<2x128xf32>
    %100 = math.tanh %99 : vector<2x128xf32>
    %101 = arith.mulf %100, %13 : vector<2x128xf32>
    %102 = arith.addf %101, %16 : vector<2x128xf32>
    %103 = vector.extract_strided_slice %102 {offsets = [0, 0], sizes = [2, 32], strides = [1, 1]} : vector<2x128xf32> to vector<2x32xf32>
    %104 = vector.extract_strided_slice %102 {offsets = [0, 32], sizes = [2, 32], strides = [1, 1]} : vector<2x128xf32> to vector<2x32xf32>
    %105 = vector.extract_strided_slice %102 {offsets = [0, 64], sizes = [2, 32], strides = [1, 1]} : vector<2x128xf32> to vector<2x32xf32>
    %106 = vector.extract_strided_slice %102 {offsets = [0, 96], sizes = [2, 32], strides = [1, 1]} : vector<2x128xf32> to vector<2x32xf32>
    %107 = arith.mulf %104, %89 : vector<2x32xf32>
    %108 = arith.mulf %103, %105 : vector<2x32xf32>
    %109 = arith.addf %107, %108 : vector<2x32xf32>
    %110 = math.tanh %109 : vector<2x32xf32>
    %111 = arith.mulf %106, %110 : vector<2x32xf32>
    %c2_66 = arith.constant 2 : index
    %c0_67 = arith.constant 0 : index
    %c0_68 = arith.constant 0 : index
    %112 = vector.load %arg5[%c2_66, %c0_67, %c0_68] : memref<4x2x32xf32, #tpu.memory_space<vmem>>, vector<1x2x32xf32>
    %113 = vector.shape_cast %112 : vector<1x2x32xf32> to vector<2x32xf32>
    %114 = vector.shape_cast %111 : vector<2x32xf32> to vector<1x2x32xf32>
    tpu.vector_store %arg5[%c2_66, %c0_67, %c0_68], %114 {strides = array<i32>} : memref<4x2x32xf32, #tpu.memory_space<vmem>>, vector<1x2x32xf32>,
    %c3_69 = arith.constant 3 : index
    %c0_70 = arith.constant 0 : index
    %c0_71 = arith.constant 0 : index
    %115 = vector.load %arg6[%c3_69, %c0_70, %c0_71] : memref<4x2x128xf32, #tpu.memory_space<vmem>>, vector<1x2x128xf32>
    %116 = vector.shape_cast %115 : vector<1x2x128xf32> to vector<2x128xf32>
    %cst_72 = arith.constant dense<0.000000e+00> : vector<2x128xf32>
    %117 = tpu.matmul %111, %3, %cst_72 {dimension_numbers = #tpu.dot_dimension_numbers<[1], [0], [0], [1], [0, 0, 1, 1], [], []>} : vector<2x32xf32>, vector<32x128xf32>, vector<2x128xf32> -> vector<2x128xf32>
    %118 = arith.addf %116, %117 : vector<2x128xf32>
    %119 = arith.mulf %118, %13 : vector<2x128xf32>
    %120 = math.tanh %119 : vector<2x128xf32>
    %121 = arith.mulf %120, %13 : vector<2x128xf32>
    %122 = arith.addf %121, %16 : vector<2x128xf32>
    %123 = vector.extract_strided_slice %122 {offsets = [0, 0], sizes = [2, 32], strides = [1, 1]} : vector<2x128xf32> to vector<2x32xf32>
    %124 = vector.extract_strided_slice %122 {offsets = [0, 32], sizes = [2, 32], strides = [1, 1]} : vector<2x128xf32> to vector<2x32xf32>
    %125 = vector.extract_strided_slice %122 {offsets = [0, 64], sizes = [2, 32], strides = [1, 1]} : vector<2x128xf32> to vector<2x32xf32>
    %126 = vector.extract_strided_slice %122 {offsets = [0, 96], sizes = [2, 32], strides = [1, 1]} : vector<2x128xf32> to vector<2x32xf32>
    %127 = arith.mulf %124, %109 : vector<2x32xf32>
    %128 = arith.mulf %123, %125 : vector<2x32xf32>
    %129 = arith.addf %127, %128 : vector<2x32xf32>
    %130 = math.tanh %129 : vector<2x32xf32>
    %131 = arith.mulf %126, %130 : vector<2x32xf32>
    %c3_73 = arith.constant 3 : index
    %c0_74 = arith.constant 0 : index
    %c0_75 = arith.constant 0 : index
    %132 = vector.load %arg5[%c3_73, %c0_74, %c0_75] : memref<4x2x32xf32, #tpu.memory_space<vmem>>, vector<1x2x32xf32>
    %133 = vector.shape_cast %132 : vector<1x2x32xf32> to vector<2x32xf32>
    %134 = vector.shape_cast %131 : vector<2x32xf32> to vector<1x2x32xf32>
    tpu.vector_store %arg5[%c3_73, %c0_74, %c0_75], %134 {strides = array<i32>} : memref<4x2x32xf32, #tpu.memory_space<vmem>>, vector<1x2x32xf32>,
    %c0_76 = arith.constant 0 : index
    %c0_77 = arith.constant 0 : index
    %c0_78 = arith.constant 0 : index
    %135 = vector.load %arg5[%c0_76, %c0_77, %c0_78] : memref<4x2x32xf32, #tpu.memory_space<vmem>>, vector<4x2x32xf32>
    %c0_79 = arith.constant 0 : index
    %c0_80 = arith.constant 0 : index
    %c0_81 = arith.constant 0 : index
    %136 = vector.load %arg4[%c0_79, %c0_80, %c0_81] : memref<16x2x32xf32, #tpu.memory_space<vmem>>, vector<4x2x32xf32>
    tpu.vector_store %arg4[%c0_79, %c0_80, %c0_81], %135 {strides = array<i32>} : memref<16x2x32xf32, #tpu.memory_space<vmem>>, vector<4x2x32xf32>,
    %c4 = arith.constant 4 : index
    %c0_82 = arith.constant 0 : index
    %c0_83 = arith.constant 0 : index
    %137 = vector.load %arg1[%c4, %c0_82, %c0_83] : memref<16x2x128xf32, #tpu.memory_space<vmem>>, vector<1x2x128xf32>
    %138 = vector.shape_cast %137 : vector<1x2x128xf32> to vector<2x128xf32>
    %c0_84 = arith.constant 0 : index
    %c0_85 = arith.constant 0 : index
    %c0_86 = arith.constant 0 : index
    %139 = vector.load %arg5[%c0_84, %c0_85, %c0_86] : memref<4x2x32xf32, #tpu.memory_space<vmem>>, vector<1x2x32xf32>
    %140 = vector.shape_cast %139 : vector<1x2x32xf32> to vector<2x32xf32>
    %cst_87 = arith.constant dense<0.000000e+00> : vector<2x128xf32>
    %141 = tpu.matmul %140, %4, %cst_87 {dimension_numbers = #tpu.dot_dimension_numbers<[1], [0], [0], [1], [0, 0, 1, 1], [], []>} : vector<2x32xf32>, vector<32x128xf32>, vector<2x128xf32> -> vector<2x128xf32>
    %142 = arith.addf %138, %141 : vector<2x128xf32>
    %c0_88 = arith.constant 0 : index
    %c0_89 = arith.constant 0 : index
    %c0_90 = arith.constant 0 : index
    %143 = vector.load %arg6[%c0_88, %c0_89, %c0_90] : memref<4x2x128xf32, #tpu.memory_space<vmem>>, vector<1x2x128xf32>
    %144 = vector.shape_cast %143 : vector<1x2x128xf32> to vector<2x128xf32>
    %145 = vector.shape_cast %142 : vector<2x128xf32> to vector<1x2x128xf32>
    tpu.vector_store %arg6[%c0_88, %c0_89, %c0_90], %145 {strides = array<i32>} : memref<4x2x128xf32, #tpu.memory_space<vmem>>, vector<1x2x128xf32>,
    %c5 = arith.constant 5 : index
    %c0_91 = arith.constant 0 : index
    %c0_92 = arith.constant 0 : index
    %146 = vector.load %arg1[%c5, %c0_91, %c0_92] : memref<16x2x128xf32, #tpu.memory_space<vmem>>, vector<1x2x128xf32>
    %147 = vector.shape_cast %146 : vector<1x2x128xf32> to vector<2x128xf32>
    %c1_93 = arith.constant 1 : index
    %c0_94 = arith.constant 0 : index
    %c0_95 = arith.constant 0 : index
    %148 = vector.load %arg5[%c1_93, %c0_94, %c0_95] : memref<4x2x32xf32, #tpu.memory_space<vmem>>, vector<1x2x32xf32>
    %149 = vector.shape_cast %148 : vector<1x2x32xf32> to vector<2x32xf32>
    %cst_96 = arith.constant dense<0.000000e+00> : vector<2x128xf32>
    %150 = tpu.matmul %149, %4, %cst_96 {dimension_numbers = #tpu.dot_dimension_numbers<[1], [0], [0], [1], [0, 0, 1, 1], [], []>} : vector<2x32xf32>, vector<32x128xf32>, vector<2x128xf32> -> vector<2x128xf32>
    %151 = arith.addf %147, %150 : vector<2x128xf32>
    %c1_97 = arith.constant 1 : index
    %c0_98 = arith.constant 0 : index
    %c0_99 = arith.constant 0 : index
    %152 = vector.load %arg6[%c1_97, %c0_98, %c0_99] : memref<4x2x128xf32, #tpu.memory_space<vmem>>, vector<1x2x128xf32>
    %153 = vector.shape_cast %152 : vector<1x2x128xf32> to vector<2x128xf32>
    %154 = vector.shape_cast %151 : vector<2x128xf32> to vector<1x2x128xf32>
    tpu.vector_store %arg6[%c1_97, %c0_98, %c0_99], %154 {strides = array<i32>} : memref<4x2x128xf32, #tpu.memory_space<vmem>>, vector<1x2x128xf32>,
    %c6 = arith.constant 6 : index
    %c0_100 = arith.constant 0 : index
    %c0_101 = arith.constant 0 : index
    %155 = vector.load %arg1[%c6, %c0_100, %c0_101] : memref<16x2x128xf32, #tpu.memory_space<vmem>>, vector<1x2x128xf32>
    %156 = vector.shape_cast %155 : vector<1x2x128xf32> to vector<2x128xf32>
    %c2_102 = arith.constant 2 : index
    %c0_103 = arith.constant 0 : index
    %c0_104 = arith.constant 0 : index
    %157 = vector.load %arg5[%c2_102, %c0_103, %c0_104] : memref<4x2x32xf32, #tpu.memory_space<vmem>>, vector<1x2x32xf32>
    %158 = vector.shape_cast %157 : vector<1x2x32xf32> to vector<2x32xf32>
    %cst_105 = arith.constant dense<0.000000e+00> : vector<2x128xf32>
    %159 = tpu.matmul %158, %4, %cst_105 {dimension_numbers = #tpu.dot_dimension_numbers<[1], [0], [0], [1], [0, 0, 1, 1], [], []>} : vector<2x32xf32>, vector<32x128xf32>, vector<2x128xf32> -> vector<2x128xf32>
    %160 = arith.addf %156, %159 : vector<2x128xf32>
    %c2_106 = arith.constant 2 : index
    %c0_107 = arith.constant 0 : index
    %c0_108 = arith.constant 0 : index
    %161 = vector.load %arg6[%c2_106, %c0_107, %c0_108] : memref<4x2x128xf32, #tpu.memory_space<vmem>>, vector<1x2x128xf32>
    %162 = vector.shape_cast %161 : vector<1x2x128xf32> to vector<2x128xf32>
    %163 = vector.shape_cast %160 : vector<2x128xf32> to vector<1x2x128xf32>
    tpu.vector_store %arg6[%c2_106, %c0_107, %c0_108], %163 {strides = array<i32>} : memref<4x2x128xf32, #tpu.memory_space<vmem>>, vector<1x2x128xf32>,
    %c7 = arith.constant 7 : index
    %c0_109 = arith.constant 0 : index
    %c0_110 = arith.constant 0 : index
    %164 = vector.load %arg1[%c7, %c0_109, %c0_110] : memref<16x2x128xf32, #tpu.memory_space<vmem>>, vector<1x2x128xf32>
    %165 = vector.shape_cast %164 : vector<1x2x128xf32> to vector<2x128xf32>
    %c3_111 = arith.constant 3 : index
    %c0_112 = arith.constant 0 : index
    %c0_113 = arith.constant 0 : index
    %166 = vector.load %arg5[%c3_111, %c0_112, %c0_113] : memref<4x2x32xf32, #tpu.memory_space<vmem>>, vector<1x2x32xf32>
    %167 = vector.shape_cast %166 : vector<1x2x32xf32> to vector<2x32xf32>
    %cst_114 = arith.constant dense<0.000000e+00> : vector<2x128xf32>
    %168 = tpu.matmul %167, %4, %cst_114 {dimension_numbers = #tpu.dot_dimension_numbers<[1], [0], [0], [1], [0, 0, 1, 1], [], []>} : vector<2x32xf32>, vector<32x128xf32>, vector<2x128xf32> -> vector<2x128xf32>
    %169 = arith.addf %165, %168 : vector<2x128xf32>
    %c3_115 = arith.constant 3 : index
    %c0_116 = arith.constant 0 : index
    %c0_117 = arith.constant 0 : index
    %170 = vector.load %arg6[%c3_115, %c0_116, %c0_117] : memref<4x2x128xf32, #tpu.memory_space<vmem>>, vector<1x2x128xf32>
    %171 = vector.shape_cast %170 : vector<1x2x128xf32> to vector<2x128xf32>
    %172 = vector.shape_cast %169 : vector<2x128xf32> to vector<1x2x128xf32>
    tpu.vector_store %arg6[%c3_115, %c0_116, %c0_117], %172 {strides = array<i32>} : memref<4x2x128xf32, #tpu.memory_space<vmem>>, vector<1x2x128xf32>,
    %c0_118 = arith.constant 0 : index
    %c0_119 = arith.constant 0 : index
    %c0_120 = arith.constant 0 : index
    %173 = vector.load %arg6[%c0_118, %c0_119, %c0_120] : memref<4x2x128xf32, #tpu.memory_space<vmem>>, vector<1x2x128xf32>
    %174 = vector.shape_cast %173 : vector<1x2x128xf32> to vector<2x128xf32>
    %cst_121 = arith.constant dense<0.000000e+00> : vector<2x128xf32>
    %175 = tpu.matmul %131, %3, %cst_121 {dimension_numbers = #tpu.dot_dimension_numbers<[1], [0], [0], [1], [0, 0, 1, 1], [], []>} : vector<2x32xf32>, vector<32x128xf32>, vector<2x128xf32> -> vector<2x128xf32>
    %176 = arith.addf %174, %175 : vector<2x128xf32>
    %177 = arith.mulf %176, %13 : vector<2x128xf32>
    %178 = math.tanh %177 : vector<2x128xf32>
    %179 = arith.mulf %178, %13 : vector<2x128xf32>
    %180 = arith.addf %179, %16 : vector<2x128xf32>
    %181 = vector.extract_strided_slice %180 {offsets = [0, 0], sizes = [2, 32], strides = [1, 1]} : vector<2x128xf32> to vector<2x32xf32>
    %182 = vector.extract_strided_slice %180 {offsets = [0, 32], sizes = [2, 32], strides = [1, 1]} : vector<2x128xf32> to vector<2x32xf32>
    %183 = vector.extract_strided_slice %180 {offsets = [0, 64], sizes = [2, 32], strides = [1, 1]} : vector<2x128xf32> to vector<2x32xf32>
    %184 = vector.extract_strided_slice %180 {offsets = [0, 96], sizes = [2, 32], strides = [1, 1]} : vector<2x128xf32> to vector<2x32xf32>
    %185 = arith.mulf %182, %129 : vector<2x32xf32>
    %186 = arith.mulf %181, %183 : vector<2x32xf32>
    %187 = arith.addf %185, %186 : vector<2x32xf32>
    %188 = math.tanh %187 : vector<2x32xf32>
    %189 = arith.mulf %184, %188 : vector<2x32xf32>
    %c0_122 = arith.constant 0 : index
    %c0_123 = arith.constant 0 : index
    %c0_124 = arith.constant 0 : index
    %190 = vector.load %arg5[%c0_122, %c0_123, %c0_124] : memref<4x2x32xf32, #tpu.memory_space<vmem>>, vector<1x2x32xf32>
    %191 = vector.shape_cast %190 : vector<1x2x32xf32> to vector<2x32xf32>
    %192 = vector.shape_cast %189 : vector<2x32xf32> to vector<1x2x32xf32>
    tpu.vector_store %arg5[%c0_122, %c0_123, %c0_124], %192 {strides = array<i32>} : memref<4x2x32xf32, #tpu.memory_space<vmem>>, vector<1x2x32xf32>,
    %c1_125 = arith.constant 1 : index
    %c0_126 = arith.constant 0 : index
    %c0_127 = arith.constant 0 : index
    %193 = vector.load %arg6[%c1_125, %c0_126, %c0_127] : memref<4x2x128xf32, #tpu.memory_space<vmem>>, vector<1x2x128xf32>
    %194 = vector.shape_cast %193 : vector<1x2x128xf32> to vector<2x128xf32>
    %cst_128 = arith.constant dense<0.000000e+00> : vector<2x128xf32>
    %195 = tpu.matmul %189, %3, %cst_128 {dimension_numbers = #tpu.dot_dimension_numbers<[1], [0], [0], [1], [0, 0, 1, 1], [], []>} : vector<2x32xf32>, vector<32x128xf32>, vector<2x128xf32> -> vector<2x128xf32>
    %196 = arith.addf %194, %195 : vector<2x128xf32>
    %197 = arith.mulf %196, %13 : vector<2x128xf32>
    %198 = math.tanh %197 : vector<2x128xf32>
    %199 = arith.mulf %198, %13 : vector<2x128xf32>
    %200 = arith.addf %199, %16 : vector<2x128xf32>
    %201 = vector.extract_strided_slice %200 {offsets = [0, 0], sizes = [2, 32], strides = [1, 1]} : vector<2x128xf32> to vector<2x32xf32>
    %202 = vector.extract_strided_slice %200 {offsets = [0, 32], sizes = [2, 32], strides = [1, 1]} : vector<2x128xf32> to vector<2x32xf32>
    %203 = vector.extract_strided_slice %200 {offsets = [0, 64], sizes = [2, 32], strides = [1, 1]} : vector<2x128xf32> to vector<2x32xf32>
    %204 = vector.extract_strided_slice %200 {offsets = [0, 96], sizes = [2, 32], strides = [1, 1]} : vector<2x128xf32> to vector<2x32xf32>
    %205 = arith.mulf %202, %187 : vector<2x32xf32>
    %206 = arith.mulf %201, %203 : vector<2x32xf32>
    %207 = arith.addf %205, %206 : vector<2x32xf32>
    %208 = math.tanh %207 : vector<2x32xf32>
    %209 = arith.mulf %204, %208 : vector<2x32xf32>
    %c1_129 = arith.constant 1 : index
    %c0_130 = arith.constant 0 : index
    %c0_131 = arith.constant 0 : index
    %210 = vector.load %arg5[%c1_129, %c0_130, %c0_131] : memref<4x2x32xf32, #tpu.memory_space<vmem>>, vector<1x2x32xf32>
    %211 = vector.shape_cast %210 : vector<1x2x32xf32> to vector<2x32xf32>
    %212 = vector.shape_cast %209 : vector<2x32xf32> to vector<1x2x32xf32>
    tpu.vector_store %arg5[%c1_129, %c0_130, %c0_131], %212 {strides = array<i32>} : memref<4x2x32xf32, #tpu.memory_space<vmem>>, vector<1x2x32xf32>,
    %c2_132 = arith.constant 2 : index
    %c0_133 = arith.constant 0 : index
    %c0_134 = arith.constant 0 : index
    %213 = vector.load %arg6[%c2_132, %c0_133, %c0_134] : memref<4x2x128xf32, #tpu.memory_space<vmem>>, vector<1x2x128xf32>
    %214 = vector.shape_cast %213 : vector<1x2x128xf32> to vector<2x128xf32>
    %cst_135 = arith.constant dense<0.000000e+00> : vector<2x128xf32>
    %215 = tpu.matmul %209, %3, %cst_135 {dimension_numbers = #tpu.dot_dimension_numbers<[1], [0], [0], [1], [0, 0, 1, 1], [], []>} : vector<2x32xf32>, vector<32x128xf32>, vector<2x128xf32> -> vector<2x128xf32>
    %216 = arith.addf %214, %215 : vector<2x128xf32>
    %217 = arith.mulf %216, %13 : vector<2x128xf32>
    %218 = math.tanh %217 : vector<2x128xf32>
    %219 = arith.mulf %218, %13 : vector<2x128xf32>
    %220 = arith.addf %219, %16 : vector<2x128xf32>
    %221 = vector.extract_strided_slice %220 {offsets = [0, 0], sizes = [2, 32], strides = [1, 1]} : vector<2x128xf32> to vector<2x32xf32>
    %222 = vector.extract_strided_slice %220 {offsets = [0, 32], sizes = [2, 32], strides = [1, 1]} : vector<2x128xf32> to vector<2x32xf32>
    %223 = vector.extract_strided_slice %220 {offsets = [0, 64], sizes = [2, 32], strides = [1, 1]} : vector<2x128xf32> to vector<2x32xf32>
    %224 = vector.extract_strided_slice %220 {offsets = [0, 96], sizes = [2, 32], strides = [1, 1]} : vector<2x128xf32> to vector<2x32xf32>
    %225 = arith.mulf %222, %207 : vector<2x32xf32>
    %226 = arith.mulf %221, %223 : vector<2x32xf32>
    %227 = arith.addf %225, %226 : vector<2x32xf32>
    %228 = math.tanh %227 : vector<2x32xf32>
    %229 = arith.mulf %224, %228 : vector<2x32xf32>
    %c2_136 = arith.constant 2 : index
    %c0_137 = arith.constant 0 : index
    %c0_138 = arith.constant 0 : index
    %230 = vector.load %arg5[%c2_136, %c0_137, %c0_138] : memref<4x2x32xf32, #tpu.memory_space<vmem>>, vector<1x2x32xf32>
    %231 = vector.shape_cast %230 : vector<1x2x32xf32> to vector<2x32xf32>
    %232 = vector.shape_cast %229 : vector<2x32xf32> to vector<1x2x32xf32>
    tpu.vector_store %arg5[%c2_136, %c0_137, %c0_138], %232 {strides = array<i32>} : memref<4x2x32xf32, #tpu.memory_space<vmem>>, vector<1x2x32xf32>,
    %c3_139 = arith.constant 3 : index
    %c0_140 = arith.constant 0 : index
    %c0_141 = arith.constant 0 : index
    %233 = vector.load %arg6[%c3_139, %c0_140, %c0_141] : memref<4x2x128xf32, #tpu.memory_space<vmem>>, vector<1x2x128xf32>
    %234 = vector.shape_cast %233 : vector<1x2x128xf32> to vector<2x128xf32>
    %cst_142 = arith.constant dense<0.000000e+00> : vector<2x128xf32>
    %235 = tpu.matmul %229, %3, %cst_142 {dimension_numbers = #tpu.dot_dimension_numbers<[1], [0], [0], [1], [0, 0, 1, 1], [], []>} : vector<2x32xf32>, vector<32x128xf32>, vector<2x128xf32> -> vector<2x128xf32>
    %236 = arith.addf %234, %235 : vector<2x128xf32>
    %237 = arith.mulf %236, %13 : vector<2x128xf32>
    %238 = math.tanh %237 : vector<2x128xf32>
    %239 = arith.mulf %238, %13 : vector<2x128xf32>
    %240 = arith.addf %239, %16 : vector<2x128xf32>
    %241 = vector.extract_strided_slice %240 {offsets = [0, 0], sizes = [2, 32], strides = [1, 1]} : vector<2x128xf32> to vector<2x32xf32>
    %242 = vector.extract_strided_slice %240 {offsets = [0, 32], sizes = [2, 32], strides = [1, 1]} : vector<2x128xf32> to vector<2x32xf32>
    %243 = vector.extract_strided_slice %240 {offsets = [0, 64], sizes = [2, 32], strides = [1, 1]} : vector<2x128xf32> to vector<2x32xf32>
    %244 = vector.extract_strided_slice %240 {offsets = [0, 96], sizes = [2, 32], strides = [1, 1]} : vector<2x128xf32> to vector<2x32xf32>
    %245 = arith.mulf %242, %227 : vector<2x32xf32>
    %246 = arith.mulf %241, %243 : vector<2x32xf32>
    %247 = arith.addf %245, %246 : vector<2x32xf32>
    %248 = math.tanh %247 : vector<2x32xf32>
    %249 = arith.mulf %244, %248 : vector<2x32xf32>
    %c3_143 = arith.constant 3 : index
    %c0_144 = arith.constant 0 : index
    %c0_145 = arith.constant 0 : index
    %250 = vector.load %arg5[%c3_143, %c0_144, %c0_145] : memref<4x2x32xf32, #tpu.memory_space<vmem>>, vector<1x2x32xf32>
    %251 = vector.shape_cast %250 : vector<1x2x32xf32> to vector<2x32xf32>
    %252 = vector.shape_cast %249 : vector<2x32xf32> to vector<1x2x32xf32>
    tpu.vector_store %arg5[%c3_143, %c0_144, %c0_145], %252 {strides = array<i32>} : memref<4x2x32xf32, #tpu.memory_space<vmem>>, vector<1x2x32xf32>,
    %c0_146 = arith.constant 0 : index
    %c0_147 = arith.constant 0 : index
    %c0_148 = arith.constant 0 : index
    %253 = vector.load %arg5[%c0_146, %c0_147, %c0_148] : memref<4x2x32xf32, #tpu.memory_space<vmem>>, vector<4x2x32xf32>
    %c4_149 = arith.constant 4 : index
    %c0_150 = arith.constant 0 : index
    %c0_151 = arith.constant 0 : index
    %254 = vector.load %arg4[%c4_149, %c0_150, %c0_151] : memref<16x2x32xf32, #tpu.memory_space<vmem>>, vector<4x2x32xf32>
    tpu.vector_store %arg4[%c4_149, %c0_150, %c0_151], %253 {strides = array<i32>} : memref<16x2x32xf32, #tpu.memory_space<vmem>>, vector<4x2x32xf32>,
    %c8 = arith.constant 8 : index
    %c0_152 = arith.constant 0 : index
    %c0_153 = arith.constant 0 : index
    %255 = vector.load %arg1[%c8, %c0_152, %c0_153] : memref<16x2x128xf32, #tpu.memory_space<vmem>>, vector<1x2x128xf32>
    %256 = vector.shape_cast %255 : vector<1x2x128xf32> to vector<2x128xf32>
    %c0_154 = arith.constant 0 : index
    %c0_155 = arith.constant 0 : index
    %c0_156 = arith.constant 0 : index
    %257 = vector.load %arg5[%c0_154, %c0_155, %c0_156] : memref<4x2x32xf32, #tpu.memory_space<vmem>>, vector<1x2x32xf32>
    %258 = vector.shape_cast %257 : vector<1x2x32xf32> to vector<2x32xf32>
    %cst_157 = arith.constant dense<0.000000e+00> : vector<2x128xf32>
    %259 = tpu.matmul %258, %4, %cst_157 {dimension_numbers = #tpu.dot_dimension_numbers<[1], [0], [0], [1], [0, 0, 1, 1], [], []>} : vector<2x32xf32>, vector<32x128xf32>, vector<2x128xf32> -> vector<2x128xf32>
    %260 = arith.addf %256, %259 : vector<2x128xf32>
    %c0_158 = arith.constant 0 : index
    %c0_159 = arith.constant 0 : index
    %c0_160 = arith.constant 0 : index
    %261 = vector.load %arg6[%c0_158, %c0_159, %c0_160] : memref<4x2x128xf32, #tpu.memory_space<vmem>>, vector<1x2x128xf32>
    %262 = vector.shape_cast %261 : vector<1x2x128xf32> to vector<2x128xf32>
    %263 = vector.shape_cast %260 : vector<2x128xf32> to vector<1x2x128xf32>
    tpu.vector_store %arg6[%c0_158, %c0_159, %c0_160], %263 {strides = array<i32>} : memref<4x2x128xf32, #tpu.memory_space<vmem>>, vector<1x2x128xf32>,
    %c9 = arith.constant 9 : index
    %c0_161 = arith.constant 0 : index
    %c0_162 = arith.constant 0 : index
    %264 = vector.load %arg1[%c9, %c0_161, %c0_162] : memref<16x2x128xf32, #tpu.memory_space<vmem>>, vector<1x2x128xf32>
    %265 = vector.shape_cast %264 : vector<1x2x128xf32> to vector<2x128xf32>
    %c1_163 = arith.constant 1 : index
    %c0_164 = arith.constant 0 : index
    %c0_165 = arith.constant 0 : index
    %266 = vector.load %arg5[%c1_163, %c0_164, %c0_165] : memref<4x2x32xf32, #tpu.memory_space<vmem>>, vector<1x2x32xf32>
    %267 = vector.shape_cast %266 : vector<1x2x32xf32> to vector<2x32xf32>
    %cst_166 = arith.constant dense<0.000000e+00> : vector<2x128xf32>
    %268 = tpu.matmul %267, %4, %cst_166 {dimension_numbers = #tpu.dot_dimension_numbers<[1], [0], [0], [1], [0, 0, 1, 1], [], []>} : vector<2x32xf32>, vector<32x128xf32>, vector<2x128xf32> -> vector<2x128xf32>
    %269 = arith.addf %265, %268 : vector<2x128xf32>
    %c1_167 = arith.constant 1 : index
    %c0_168 = arith.constant 0 : index
    %c0_169 = arith.constant 0 : index
    %270 = vector.load %arg6[%c1_167, %c0_168, %c0_169] : memref<4x2x128xf32, #tpu.memory_space<vmem>>, vector<1x2x128xf32>
    %271 = vector.shape_cast %270 : vector<1x2x128xf32> to vector<2x128xf32>
    %272 = vector.shape_cast %269 : vector<2x128xf32> to vector<1x2x128xf32>
    tpu.vector_store %arg6[%c1_167, %c0_168, %c0_169], %272 {strides = array<i32>} : memref<4x2x128xf32, #tpu.memory_space<vmem>>, vector<1x2x128xf32>,
    %c10 = arith.constant 10 : index
    %c0_170 = arith.constant 0 : index
    %c0_171 = arith.constant 0 : index
    %273 = vector.load %arg1[%c10, %c0_170, %c0_171] : memref<16x2x128xf32, #tpu.memory_space<vmem>>, vector<1x2x128xf32>
    %274 = vector.shape_cast %273 : vector<1x2x128xf32> to vector<2x128xf32>
    %c2_172 = arith.constant 2 : index
    %c0_173 = arith.constant 0 : index
    %c0_174 = arith.constant 0 : index
    %275 = vector.load %arg5[%c2_172, %c0_173, %c0_174] : memref<4x2x32xf32, #tpu.memory_space<vmem>>, vector<1x2x32xf32>
    %276 = vector.shape_cast %275 : vector<1x2x32xf32> to vector<2x32xf32>
    %cst_175 = arith.constant dense<0.000000e+00> : vector<2x128xf32>
    %277 = tpu.matmul %276, %4, %cst_175 {dimension_numbers = #tpu.dot_dimension_numbers<[1], [0], [0], [1], [0, 0, 1, 1], [], []>} : vector<2x32xf32>, vector<32x128xf32>, vector<2x128xf32> -> vector<2x128xf32>
    %278 = arith.addf %274, %277 : vector<2x128xf32>
    %c2_176 = arith.constant 2 : index
    %c0_177 = arith.constant 0 : index
    %c0_178 = arith.constant 0 : index
    %279 = vector.load %arg6[%c2_176, %c0_177, %c0_178] : memref<4x2x128xf32, #tpu.memory_space<vmem>>, vector<1x2x128xf32>
    %280 = vector.shape_cast %279 : vector<1x2x128xf32> to vector<2x128xf32>
    %281 = vector.shape_cast %278 : vector<2x128xf32> to vector<1x2x128xf32>
    tpu.vector_store %arg6[%c2_176, %c0_177, %c0_178], %281 {strides = array<i32>} : memref<4x2x128xf32, #tpu.memory_space<vmem>>, vector<1x2x128xf32>,
    %c11 = arith.constant 11 : index
    %c0_179 = arith.constant 0 : index
    %c0_180 = arith.constant 0 : index
    %282 = vector.load %arg1[%c11, %c0_179, %c0_180] : memref<16x2x128xf32, #tpu.memory_space<vmem>>, vector<1x2x128xf32>
    %283 = vector.shape_cast %282 : vector<1x2x128xf32> to vector<2x128xf32>
    %c3_181 = arith.constant 3 : index
    %c0_182 = arith.constant 0 : index
    %c0_183 = arith.constant 0 : index
    %284 = vector.load %arg5[%c3_181, %c0_182, %c0_183] : memref<4x2x32xf32, #tpu.memory_space<vmem>>, vector<1x2x32xf32>
    %285 = vector.shape_cast %284 : vector<1x2x32xf32> to vector<2x32xf32>
    %cst_184 = arith.constant dense<0.000000e+00> : vector<2x128xf32>
    %286 = tpu.matmul %285, %4, %cst_184 {dimension_numbers = #tpu.dot_dimension_numbers<[1], [0], [0], [1], [0, 0, 1, 1], [], []>} : vector<2x32xf32>, vector<32x128xf32>, vector<2x128xf32> -> vector<2x128xf32>
    %287 = arith.addf %283, %286 : vector<2x128xf32>
    %c3_185 = arith.constant 3 : index
    %c0_186 = arith.constant 0 : index
    %c0_187 = arith.constant 0 : index
    %288 = vector.load %arg6[%c3_185, %c0_186, %c0_187] : memref<4x2x128xf32, #tpu.memory_space<vmem>>, vector<1x2x128xf32>
    %289 = vector.shape_cast %288 : vector<1x2x128xf32> to vector<2x128xf32>
    %290 = vector.shape_cast %287 : vector<2x128xf32> to vector<1x2x128xf32>
    tpu.vector_store %arg6[%c3_185, %c0_186, %c0_187], %290 {strides = array<i32>} : memref<4x2x128xf32, #tpu.memory_space<vmem>>, vector<1x2x128xf32>,
    %c0_188 = arith.constant 0 : index
    %c0_189 = arith.constant 0 : index
    %c0_190 = arith.constant 0 : index
    %291 = vector.load %arg6[%c0_188, %c0_189, %c0_190] : memref<4x2x128xf32, #tpu.memory_space<vmem>>, vector<1x2x128xf32>
    %292 = vector.shape_cast %291 : vector<1x2x128xf32> to vector<2x128xf32>
    %cst_191 = arith.constant dense<0.000000e+00> : vector<2x128xf32>
    %293 = tpu.matmul %249, %3, %cst_191 {dimension_numbers = #tpu.dot_dimension_numbers<[1], [0], [0], [1], [0, 0, 1, 1], [], []>} : vector<2x32xf32>, vector<32x128xf32>, vector<2x128xf32> -> vector<2x128xf32>
    %294 = arith.addf %292, %293 : vector<2x128xf32>
    %295 = arith.mulf %294, %13 : vector<2x128xf32>
    %296 = math.tanh %295 : vector<2x128xf32>
    %297 = arith.mulf %296, %13 : vector<2x128xf32>
    %298 = arith.addf %297, %16 : vector<2x128xf32>
    %299 = vector.extract_strided_slice %298 {offsets = [0, 0], sizes = [2, 32], strides = [1, 1]} : vector<2x128xf32> to vector<2x32xf32>
    %300 = vector.extract_strided_slice %298 {offsets = [0, 32], sizes = [2, 32], strides = [1, 1]} : vector<2x128xf32> to vector<2x32xf32>
    %301 = vector.extract_strided_slice %298 {offsets = [0, 64], sizes = [2, 32], strides = [1, 1]} : vector<2x128xf32> to vector<2x32xf32>
    %302 = vector.extract_strided_slice %298 {offsets = [0, 96], sizes = [2, 32], strides = [1, 1]} : vector<2x128xf32> to vector<2x32xf32>
    %303 = arith.mulf %300, %247 : vector<2x32xf32>
    %304 = arith.mulf %299, %301 : vector<2x32xf32>
    %305 = arith.addf %303, %304 : vector<2x32xf32>
    %306 = math.tanh %305 : vector<2x32xf32>
    %307 = arith.mulf %302, %306 : vector<2x32xf32>
    %c0_192 = arith.constant 0 : index
    %c0_193 = arith.constant 0 : index
    %c0_194 = arith.constant 0 : index
    %308 = vector.load %arg5[%c0_192, %c0_193, %c0_194] : memref<4x2x32xf32, #tpu.memory_space<vmem>>, vector<1x2x32xf32>
    %309 = vector.shape_cast %308 : vector<1x2x32xf32> to vector<2x32xf32>
    %310 = vector.shape_cast %307 : vector<2x32xf32> to vector<1x2x32xf32>
    tpu.vector_store %arg5[%c0_192, %c0_193, %c0_194], %310 {strides = array<i32>} : memref<4x2x32xf32, #tpu.memory_space<vmem>>, vector<1x2x32xf32>,
    %c1_195 = arith.constant 1 : index
    %c0_196 = arith.constant 0 : index
    %c0_197 = arith.constant 0 : index
    %311 = vector.load %arg6[%c1_195, %c0_196, %c0_197] : memref<4x2x128xf32, #tpu.memory_space<vmem>>, vector<1x2x128xf32>
    %312 = vector.shape_cast %311 : vector<1x2x128xf32> to vector<2x128xf32>
    %cst_198 = arith.constant dense<0.000000e+00> : vector<2x128xf32>
    %313 = tpu.matmul %307, %3, %cst_198 {dimension_numbers = #tpu.dot_dimension_numbers<[1], [0], [0], [1], [0, 0, 1, 1], [], []>} : vector<2x32xf32>, vector<32x128xf32>, vector<2x128xf32> -> vector<2x128xf32>
    %314 = arith.addf %312, %313 : vector<2x128xf32>
    %315 = arith.mulf %314, %13 : vector<2x128xf32>
    %316 = math.tanh %315 : vector<2x128xf32>
    %317 = arith.mulf %316, %13 : vector<2x128xf32>
    %318 = arith.addf %317, %16 : vector<2x128xf32>
    %319 = vector.extract_strided_slice %318 {offsets = [0, 0], sizes = [2, 32], strides = [1, 1]} : vector<2x128xf32> to vector<2x32xf32>
    %320 = vector.extract_strided_slice %318 {offsets = [0, 32], sizes = [2, 32], strides = [1, 1]} : vector<2x128xf32> to vector<2x32xf32>
    %321 = vector.extract_strided_slice %318 {offsets = [0, 64], sizes = [2, 32], strides = [1, 1]} : vector<2x128xf32> to vector<2x32xf32>
    %322 = vector.extract_strided_slice %318 {offsets = [0, 96], sizes = [2, 32], strides = [1, 1]} : vector<2x128xf32> to vector<2x32xf32>
    %323 = arith.mulf %320, %305 : vector<2x32xf32>
    %324 = arith.mulf %319, %321 : vector<2x32xf32>
    %325 = arith.addf %323, %324 : vector<2x32xf32>
    %326 = math.tanh %325 : vector<2x32xf32>
    %327 = arith.mulf %322, %326 : vector<2x32xf32>
    %c1_199 = arith.constant 1 : index
    %c0_200 = arith.constant 0 : index
    %c0_201 = arith.constant 0 : index
    %328 = vector.load %arg5[%c1_199, %c0_200, %c0_201] : memref<4x2x32xf32, #tpu.memory_space<vmem>>, vector<1x2x32xf32>
    %329 = vector.shape_cast %328 : vector<1x2x32xf32> to vector<2x32xf32>
    %330 = vector.shape_cast %327 : vector<2x32xf32> to vector<1x2x32xf32>
    tpu.vector_store %arg5[%c1_199, %c0_200, %c0_201], %330 {strides = array<i32>} : memref<4x2x32xf32, #tpu.memory_space<vmem>>, vector<1x2x32xf32>,
    %c2_202 = arith.constant 2 : index
    %c0_203 = arith.constant 0 : index
    %c0_204 = arith.constant 0 : index
    %331 = vector.load %arg6[%c2_202, %c0_203, %c0_204] : memref<4x2x128xf32, #tpu.memory_space<vmem>>, vector<1x2x128xf32>
    %332 = vector.shape_cast %331 : vector<1x2x128xf32> to vector<2x128xf32>
    %cst_205 = arith.constant dense<0.000000e+00> : vector<2x128xf32>
    %333 = tpu.matmul %327, %3, %cst_205 {dimension_numbers = #tpu.dot_dimension_numbers<[1], [0], [0], [1], [0, 0, 1, 1], [], []>} : vector<2x32xf32>, vector<32x128xf32>, vector<2x128xf32> -> vector<2x128xf32>
    %334 = arith.addf %332, %333 : vector<2x128xf32>
    %335 = arith.mulf %334, %13 : vector<2x128xf32>
    %336 = math.tanh %335 : vector<2x128xf32>
    %337 = arith.mulf %336, %13 : vector<2x128xf32>
    %338 = arith.addf %337, %16 : vector<2x128xf32>
    %339 = vector.extract_strided_slice %338 {offsets = [0, 0], sizes = [2, 32], strides = [1, 1]} : vector<2x128xf32> to vector<2x32xf32>
    %340 = vector.extract_strided_slice %338 {offsets = [0, 32], sizes = [2, 32], strides = [1, 1]} : vector<2x128xf32> to vector<2x32xf32>
    %341 = vector.extract_strided_slice %338 {offsets = [0, 64], sizes = [2, 32], strides = [1, 1]} : vector<2x128xf32> to vector<2x32xf32>
    %342 = vector.extract_strided_slice %338 {offsets = [0, 96], sizes = [2, 32], strides = [1, 1]} : vector<2x128xf32> to vector<2x32xf32>
    %343 = arith.mulf %340, %325 : vector<2x32xf32>
    %344 = arith.mulf %339, %341 : vector<2x32xf32>
    %345 = arith.addf %343, %344 : vector<2x32xf32>
    %346 = math.tanh %345 : vector<2x32xf32>
    %347 = arith.mulf %342, %346 : vector<2x32xf32>
    %c2_206 = arith.constant 2 : index
    %c0_207 = arith.constant 0 : index
    %c0_208 = arith.constant 0 : index
    %348 = vector.load %arg5[%c2_206, %c0_207, %c0_208] : memref<4x2x32xf32, #tpu.memory_space<vmem>>, vector<1x2x32xf32>
    %349 = vector.shape_cast %348 : vector<1x2x32xf32> to vector<2x32xf32>
    %350 = vector.shape_cast %347 : vector<2x32xf32> to vector<1x2x32xf32>
    tpu.vector_store %arg5[%c2_206, %c0_207, %c0_208], %350 {strides = array<i32>} : memref<4x2x32xf32, #tpu.memory_space<vmem>>, vector<1x2x32xf32>,
    %c3_209 = arith.constant 3 : index
    %c0_210 = arith.constant 0 : index
    %c0_211 = arith.constant 0 : index
    %351 = vector.load %arg6[%c3_209, %c0_210, %c0_211] : memref<4x2x128xf32, #tpu.memory_space<vmem>>, vector<1x2x128xf32>
    %352 = vector.shape_cast %351 : vector<1x2x128xf32> to vector<2x128xf32>
    %cst_212 = arith.constant dense<0.000000e+00> : vector<2x128xf32>
    %353 = tpu.matmul %347, %3, %cst_212 {dimension_numbers = #tpu.dot_dimension_numbers<[1], [0], [0], [1], [0, 0, 1, 1], [], []>} : vector<2x32xf32>, vector<32x128xf32>, vector<2x128xf32> -> vector<2x128xf32>
    %354 = arith.addf %352, %353 : vector<2x128xf32>
    %355 = arith.mulf %354, %13 : vector<2x128xf32>
    %356 = math.tanh %355 : vector<2x128xf32>
    %357 = arith.mulf %356, %13 : vector<2x128xf32>
    %358 = arith.addf %357, %16 : vector<2x128xf32>
    %359 = vector.extract_strided_slice %358 {offsets = [0, 0], sizes = [2, 32], strides = [1, 1]} : vector<2x128xf32> to vector<2x32xf32>
    %360 = vector.extract_strided_slice %358 {offsets = [0, 32], sizes = [2, 32], strides = [1, 1]} : vector<2x128xf32> to vector<2x32xf32>
    %361 = vector.extract_strided_slice %358 {offsets = [0, 64], sizes = [2, 32], strides = [1, 1]} : vector<2x128xf32> to vector<2x32xf32>
    %362 = vector.extract_strided_slice %358 {offsets = [0, 96], sizes = [2, 32], strides = [1, 1]} : vector<2x128xf32> to vector<2x32xf32>
    %363 = arith.mulf %360, %345 : vector<2x32xf32>
    %364 = arith.mulf %359, %361 : vector<2x32xf32>
    %365 = arith.addf %363, %364 : vector<2x32xf32>
    %366 = math.tanh %365 : vector<2x32xf32>
    %367 = arith.mulf %362, %366 : vector<2x32xf32>
    %c3_213 = arith.constant 3 : index
    %c0_214 = arith.constant 0 : index
    %c0_215 = arith.constant 0 : index
    %368 = vector.load %arg5[%c3_213, %c0_214, %c0_215] : memref<4x2x32xf32, #tpu.memory_space<vmem>>, vector<1x2x32xf32>
    %369 = vector.shape_cast %368 : vector<1x2x32xf32> to vector<2x32xf32>
    %370 = vector.shape_cast %367 : vector<2x32xf32> to vector<1x2x32xf32>
    tpu.vector_store %arg5[%c3_213, %c0_214, %c0_215], %370 {strides = array<i32>} : memref<4x2x32xf32, #tpu.memory_space<vmem>>, vector<1x2x32xf32>,
    %c0_216 = arith.constant 0 : index
    %c0_217 = arith.constant 0 : index
    %c0_218 = arith.constant 0 : index
    %371 = vector.load %arg5[%c0_216, %c0_217, %c0_218] : memref<4x2x32xf32, #tpu.memory_space<vmem>>, vector<4x2x32xf32>
    %c8_219 = arith.constant 8 : index
    %c0_220 = arith.constant 0 : index
    %c0_221 = arith.constant 0 : index
    %372 = vector.load %arg4[%c8_219, %c0_220, %c0_221] : memref<16x2x32xf32, #tpu.memory_space<vmem>>, vector<4x2x32xf32>
    tpu.vector_store %arg4[%c8_219, %c0_220, %c0_221], %371 {strides = array<i32>} : memref<16x2x32xf32, #tpu.memory_space<vmem>>, vector<4x2x32xf32>,
    %c12 = arith.constant 12 : index
    %c0_222 = arith.constant 0 : index
    %c0_223 = arith.constant 0 : index
    %373 = vector.load %arg1[%c12, %c0_222, %c0_223] : memref<16x2x128xf32, #tpu.memory_space<vmem>>, vector<1x2x128xf32>
    %374 = vector.shape_cast %373 : vector<1x2x128xf32> to vector<2x128xf32>
    %c0_224 = arith.constant 0 : index
    %c0_225 = arith.constant 0 : index
    %c0_226 = arith.constant 0 : index
    %375 = vector.load %arg5[%c0_224, %c0_225, %c0_226] : memref<4x2x32xf32, #tpu.memory_space<vmem>>, vector<1x2x32xf32>
    %376 = vector.shape_cast %375 : vector<1x2x32xf32> to vector<2x32xf32>
    %cst_227 = arith.constant dense<0.000000e+00> : vector<2x128xf32>
    %377 = tpu.matmul %376, %4, %cst_227 {dimension_numbers = #tpu.dot_dimension_numbers<[1], [0], [0], [1], [0, 0, 1, 1], [], []>} : vector<2x32xf32>, vector<32x128xf32>, vector<2x128xf32> -> vector<2x128xf32>
    %378 = arith.addf %374, %377 : vector<2x128xf32>
    %c0_228 = arith.constant 0 : index
    %c0_229 = arith.constant 0 : index
    %c0_230 = arith.constant 0 : index
    %379 = vector.load %arg6[%c0_228, %c0_229, %c0_230] : memref<4x2x128xf32, #tpu.memory_space<vmem>>, vector<1x2x128xf32>
    %380 = vector.shape_cast %379 : vector<1x2x128xf32> to vector<2x128xf32>
    %381 = vector.shape_cast %378 : vector<2x128xf32> to vector<1x2x128xf32>
    tpu.vector_store %arg6[%c0_228, %c0_229, %c0_230], %381 {strides = array<i32>} : memref<4x2x128xf32, #tpu.memory_space<vmem>>, vector<1x2x128xf32>,
    %c13 = arith.constant 13 : index
    %c0_231 = arith.constant 0 : index
    %c0_232 = arith.constant 0 : index
    %382 = vector.load %arg1[%c13, %c0_231, %c0_232] : memref<16x2x128xf32, #tpu.memory_space<vmem>>, vector<1x2x128xf32>
    %383 = vector.shape_cast %382 : vector<1x2x128xf32> to vector<2x128xf32>
    %c1_233 = arith.constant 1 : index
    %c0_234 = arith.constant 0 : index
    %c0_235 = arith.constant 0 : index
    %384 = vector.load %arg5[%c1_233, %c0_234, %c0_235] : memref<4x2x32xf32, #tpu.memory_space<vmem>>, vector<1x2x32xf32>
    %385 = vector.shape_cast %384 : vector<1x2x32xf32> to vector<2x32xf32>
    %cst_236 = arith.constant dense<0.000000e+00> : vector<2x128xf32>
    %386 = tpu.matmul %385, %4, %cst_236 {dimension_numbers = #tpu.dot_dimension_numbers<[1], [0], [0], [1], [0, 0, 1, 1], [], []>} : vector<2x32xf32>, vector<32x128xf32>, vector<2x128xf32> -> vector<2x128xf32>
    %387 = arith.addf %383, %386 : vector<2x128xf32>
    %c1_237 = arith.constant 1 : index
    %c0_238 = arith.constant 0 : index
    %c0_239 = arith.constant 0 : index
    %388 = vector.load %arg6[%c1_237, %c0_238, %c0_239] : memref<4x2x128xf32, #tpu.memory_space<vmem>>, vector<1x2x128xf32>
    %389 = vector.shape_cast %388 : vector<1x2x128xf32> to vector<2x128xf32>
    %390 = vector.shape_cast %387 : vector<2x128xf32> to vector<1x2x128xf32>
    tpu.vector_store %arg6[%c1_237, %c0_238, %c0_239], %390 {strides = array<i32>} : memref<4x2x128xf32, #tpu.memory_space<vmem>>, vector<1x2x128xf32>,
    %c14 = arith.constant 14 : index
    %c0_240 = arith.constant 0 : index
    %c0_241 = arith.constant 0 : index
    %391 = vector.load %arg1[%c14, %c0_240, %c0_241] : memref<16x2x128xf32, #tpu.memory_space<vmem>>, vector<1x2x128xf32>
    %392 = vector.shape_cast %391 : vector<1x2x128xf32> to vector<2x128xf32>
    %c2_242 = arith.constant 2 : index
    %c0_243 = arith.constant 0 : index
    %c0_244 = arith.constant 0 : index
    %393 = vector.load %arg5[%c2_242, %c0_243, %c0_244] : memref<4x2x32xf32, #tpu.memory_space<vmem>>, vector<1x2x32xf32>
    %394 = vector.shape_cast %393 : vector<1x2x32xf32> to vector<2x32xf32>
    %cst_245 = arith.constant dense<0.000000e+00> : vector<2x128xf32>
    %395 = tpu.matmul %394, %4, %cst_245 {dimension_numbers = #tpu.dot_dimension_numbers<[1], [0], [0], [1], [0, 0, 1, 1], [], []>} : vector<2x32xf32>, vector<32x128xf32>, vector<2x128xf32> -> vector<2x128xf32>
    %396 = arith.addf %392, %395 : vector<2x128xf32>
    %c2_246 = arith.constant 2 : index
    %c0_247 = arith.constant 0 : index
    %c0_248 = arith.constant 0 : index
    %397 = vector.load %arg6[%c2_246, %c0_247, %c0_248] : memref<4x2x128xf32, #tpu.memory_space<vmem>>, vector<1x2x128xf32>
    %398 = vector.shape_cast %397 : vector<1x2x128xf32> to vector<2x128xf32>
    %399 = vector.shape_cast %396 : vector<2x128xf32> to vector<1x2x128xf32>
    tpu.vector_store %arg6[%c2_246, %c0_247, %c0_248], %399 {strides = array<i32>} : memref<4x2x128xf32, #tpu.memory_space<vmem>>, vector<1x2x128xf32>,
    %c15 = arith.constant 15 : index
    %c0_249 = arith.constant 0 : index
    %c0_250 = arith.constant 0 : index
    %400 = vector.load %arg1[%c15, %c0_249, %c0_250] : memref<16x2x128xf32, #tpu.memory_space<vmem>>, vector<1x2x128xf32>
    %401 = vector.shape_cast %400 : vector<1x2x128xf32> to vector<2x128xf32>
    %c3_251 = arith.constant 3 : index
    %c0_252 = arith.constant 0 : index
    %c0_253 = arith.constant 0 : index
    %402 = vector.load %arg5[%c3_251, %c0_252, %c0_253] : memref<4x2x32xf32, #tpu.memory_space<vmem>>, vector<1x2x32xf32>
    %403 = vector.shape_cast %402 : vector<1x2x32xf32> to vector<2x32xf32>
    %cst_254 = arith.constant dense<0.000000e+00> : vector<2x128xf32>
    %404 = tpu.matmul %403, %4, %cst_254 {dimension_numbers = #tpu.dot_dimension_numbers<[1], [0], [0], [1], [0, 0, 1, 1], [], []>} : vector<2x32xf32>, vector<32x128xf32>, vector<2x128xf32> -> vector<2x128xf32>
    %405 = arith.addf %401, %404 : vector<2x128xf32>
    %c3_255 = arith.constant 3 : index
    %c0_256 = arith.constant 0 : index
    %c0_257 = arith.constant 0 : index
    %406 = vector.load %arg6[%c3_255, %c0_256, %c0_257] : memref<4x2x128xf32, #tpu.memory_space<vmem>>, vector<1x2x128xf32>
    %407 = vector.shape_cast %406 : vector<1x2x128xf32> to vector<2x128xf32>
    %408 = vector.shape_cast %405 : vector<2x128xf32> to vector<1x2x128xf32>
    tpu.vector_store %arg6[%c3_255, %c0_256, %c0_257], %408 {strides = array<i32>} : memref<4x2x128xf32, #tpu.memory_space<vmem>>, vector<1x2x128xf32>,
    %c0_258 = arith.constant 0 : index
    %c0_259 = arith.constant 0 : index
    %c0_260 = arith.constant 0 : index
    %409 = vector.load %arg6[%c0_258, %c0_259, %c0_260] : memref<4x2x128xf32, #tpu.memory_space<vmem>>, vector<1x2x128xf32>
    %410 = vector.shape_cast %409 : vector<1x2x128xf32> to vector<2x128xf32>
    %cst_261 = arith.constant dense<0.000000e+00> : vector<2x128xf32>
    %411 = tpu.matmul %367, %3, %cst_261 {dimension_numbers = #tpu.dot_dimension_numbers<[1], [0], [0], [1], [0, 0, 1, 1], [], []>} : vector<2x32xf32>, vector<32x128xf32>, vector<2x128xf32> -> vector<2x128xf32>
    %412 = arith.addf %410, %411 : vector<2x128xf32>
    %413 = arith.mulf %412, %13 : vector<2x128xf32>
    %414 = math.tanh %413 : vector<2x128xf32>
    %415 = arith.mulf %414, %13 : vector<2x128xf32>
    %416 = arith.addf %415, %16 : vector<2x128xf32>
    %417 = vector.extract_strided_slice %416 {offsets = [0, 0], sizes = [2, 32], strides = [1, 1]} : vector<2x128xf32> to vector<2x32xf32>
    %418 = vector.extract_strided_slice %416 {offsets = [0, 32], sizes = [2, 32], strides = [1, 1]} : vector<2x128xf32> to vector<2x32xf32>
    %419 = vector.extract_strided_slice %416 {offsets = [0, 64], sizes = [2, 32], strides = [1, 1]} : vector<2x128xf32> to vector<2x32xf32>
    %420 = vector.extract_strided_slice %416 {offsets = [0, 96], sizes = [2, 32], strides = [1, 1]} : vector<2x128xf32> to vector<2x32xf32>
    %421 = arith.mulf %418, %365 : vector<2x32xf32>
    %422 = arith.mulf %417, %419 : vector<2x32xf32>
    %423 = arith.addf %421, %422 : vector<2x32xf32>
    %424 = math.tanh %423 : vector<2x32xf32>
    %425 = arith.mulf %420, %424 : vector<2x32xf32>
    %c0_262 = arith.constant 0 : index
    %c0_263 = arith.constant 0 : index
    %c0_264 = arith.constant 0 : index
    %426 = vector.load %arg5[%c0_262, %c0_263, %c0_264] : memref<4x2x32xf32, #tpu.memory_space<vmem>>, vector<1x2x32xf32>
    %427 = vector.shape_cast %426 : vector<1x2x32xf32> to vector<2x32xf32>
    %428 = vector.shape_cast %425 : vector<2x32xf32> to vector<1x2x32xf32>
    tpu.vector_store %arg5[%c0_262, %c0_263, %c0_264], %428 {strides = array<i32>} : memref<4x2x32xf32, #tpu.memory_space<vmem>>, vector<1x2x32xf32>,
    %c1_265 = arith.constant 1 : index
    %c0_266 = arith.constant 0 : index
    %c0_267 = arith.constant 0 : index
    %429 = vector.load %arg6[%c1_265, %c0_266, %c0_267] : memref<4x2x128xf32, #tpu.memory_space<vmem>>, vector<1x2x128xf32>
    %430 = vector.shape_cast %429 : vector<1x2x128xf32> to vector<2x128xf32>
    %cst_268 = arith.constant dense<0.000000e+00> : vector<2x128xf32>
    %431 = tpu.matmul %425, %3, %cst_268 {dimension_numbers = #tpu.dot_dimension_numbers<[1], [0], [0], [1], [0, 0, 1, 1], [], []>} : vector<2x32xf32>, vector<32x128xf32>, vector<2x128xf32> -> vector<2x128xf32>
    %432 = arith.addf %430, %431 : vector<2x128xf32>
    %433 = arith.mulf %432, %13 : vector<2x128xf32>
    %434 = math.tanh %433 : vector<2x128xf32>
    %435 = arith.mulf %434, %13 : vector<2x128xf32>
    %436 = arith.addf %435, %16 : vector<2x128xf32>
    %437 = vector.extract_strided_slice %436 {offsets = [0, 0], sizes = [2, 32], strides = [1, 1]} : vector<2x128xf32> to vector<2x32xf32>
    %438 = vector.extract_strided_slice %436 {offsets = [0, 32], sizes = [2, 32], strides = [1, 1]} : vector<2x128xf32> to vector<2x32xf32>
    %439 = vector.extract_strided_slice %436 {offsets = [0, 64], sizes = [2, 32], strides = [1, 1]} : vector<2x128xf32> to vector<2x32xf32>
    %440 = vector.extract_strided_slice %436 {offsets = [0, 96], sizes = [2, 32], strides = [1, 1]} : vector<2x128xf32> to vector<2x32xf32>
    %441 = arith.mulf %438, %423 : vector<2x32xf32>
    %442 = arith.mulf %437, %439 : vector<2x32xf32>
    %443 = arith.addf %441, %442 : vector<2x32xf32>
    %444 = math.tanh %443 : vector<2x32xf32>
    %445 = arith.mulf %440, %444 : vector<2x32xf32>
    %c1_269 = arith.constant 1 : index
    %c0_270 = arith.constant 0 : index
    %c0_271 = arith.constant 0 : index
    %446 = vector.load %arg5[%c1_269, %c0_270, %c0_271] : memref<4x2x32xf32, #tpu.memory_space<vmem>>, vector<1x2x32xf32>
    %447 = vector.shape_cast %446 : vector<1x2x32xf32> to vector<2x32xf32>
    %448 = vector.shape_cast %445 : vector<2x32xf32> to vector<1x2x32xf32>
    tpu.vector_store %arg5[%c1_269, %c0_270, %c0_271], %448 {strides = array<i32>} : memref<4x2x32xf32, #tpu.memory_space<vmem>>, vector<1x2x32xf32>,
    %c2_272 = arith.constant 2 : index
    %c0_273 = arith.constant 0 : index
    %c0_274 = arith.constant 0 : index
    %449 = vector.load %arg6[%c2_272, %c0_273, %c0_274] : memref<4x2x128xf32, #tpu.memory_space<vmem>>, vector<1x2x128xf32>
    %450 = vector.shape_cast %449 : vector<1x2x128xf32> to vector<2x128xf32>
    %cst_275 = arith.constant dense<0.000000e+00> : vector<2x128xf32>
    %451 = tpu.matmul %445, %3, %cst_275 {dimension_numbers = #tpu.dot_dimension_numbers<[1], [0], [0], [1], [0, 0, 1, 1], [], []>} : vector<2x32xf32>, vector<32x128xf32>, vector<2x128xf32> -> vector<2x128xf32>
    %452 = arith.addf %450, %451 : vector<2x128xf32>
    %453 = arith.mulf %452, %13 : vector<2x128xf32>
    %454 = math.tanh %453 : vector<2x128xf32>
    %455 = arith.mulf %454, %13 : vector<2x128xf32>
    %456 = arith.addf %455, %16 : vector<2x128xf32>
    %457 = vector.extract_strided_slice %456 {offsets = [0, 0], sizes = [2, 32], strides = [1, 1]} : vector<2x128xf32> to vector<2x32xf32>
    %458 = vector.extract_strided_slice %456 {offsets = [0, 32], sizes = [2, 32], strides = [1, 1]} : vector<2x128xf32> to vector<2x32xf32>
    %459 = vector.extract_strided_slice %456 {offsets = [0, 64], sizes = [2, 32], strides = [1, 1]} : vector<2x128xf32> to vector<2x32xf32>
    %460 = vector.extract_strided_slice %456 {offsets = [0, 96], sizes = [2, 32], strides = [1, 1]} : vector<2x128xf32> to vector<2x32xf32>
    %461 = arith.mulf %458, %443 : vector<2x32xf32>
    %462 = arith.mulf %457, %459 : vector<2x32xf32>
    %463 = arith.addf %461, %462 : vector<2x32xf32>
    %464 = math.tanh %463 : vector<2x32xf32>
    %465 = arith.mulf %460, %464 : vector<2x32xf32>
    %c2_276 = arith.constant 2 : index
    %c0_277 = arith.constant 0 : index
    %c0_278 = arith.constant 0 : index
    %466 = vector.load %arg5[%c2_276, %c0_277, %c0_278] : memref<4x2x32xf32, #tpu.memory_space<vmem>>, vector<1x2x32xf32>
    %467 = vector.shape_cast %466 : vector<1x2x32xf32> to vector<2x32xf32>
    %468 = vector.shape_cast %465 : vector<2x32xf32> to vector<1x2x32xf32>
    tpu.vector_store %arg5[%c2_276, %c0_277, %c0_278], %468 {strides = array<i32>} : memref<4x2x32xf32, #tpu.memory_space<vmem>>, vector<1x2x32xf32>,
    %c3_279 = arith.constant 3 : index
    %c0_280 = arith.constant 0 : index
    %c0_281 = arith.constant 0 : index
    %469 = vector.load %arg6[%c3_279, %c0_280, %c0_281] : memref<4x2x128xf32, #tpu.memory_space<vmem>>, vector<1x2x128xf32>
    %470 = vector.shape_cast %469 : vector<1x2x128xf32> to vector<2x128xf32>
    %cst_282 = arith.constant dense<0.000000e+00> : vector<2x128xf32>
    %471 = tpu.matmul %465, %3, %cst_282 {dimension_numbers = #tpu.dot_dimension_numbers<[1], [0], [0], [1], [0, 0, 1, 1], [], []>} : vector<2x32xf32>, vector<32x128xf32>, vector<2x128xf32> -> vector<2x128xf32>
    %472 = arith.addf %470, %471 : vector<2x128xf32>
    %473 = arith.mulf %472, %13 : vector<2x128xf32>
    %474 = math.tanh %473 : vector<2x128xf32>
    %475 = arith.mulf %474, %13 : vector<2x128xf32>
    %476 = arith.addf %475, %16 : vector<2x128xf32>
    %477 = vector.extract_strided_slice %476 {offsets = [0, 0], sizes = [2, 32], strides = [1, 1]} : vector<2x128xf32> to vector<2x32xf32>
    %478 = vector.extract_strided_slice %476 {offsets = [0, 32], sizes = [2, 32], strides = [1, 1]} : vector<2x128xf32> to vector<2x32xf32>
    %479 = vector.extract_strided_slice %476 {offsets = [0, 64], sizes = [2, 32], strides = [1, 1]} : vector<2x128xf32> to vector<2x32xf32>
    %480 = vector.extract_strided_slice %476 {offsets = [0, 96], sizes = [2, 32], strides = [1, 1]} : vector<2x128xf32> to vector<2x32xf32>
    %481 = arith.mulf %478, %463 : vector<2x32xf32>
    %482 = arith.mulf %477, %479 : vector<2x32xf32>
    %483 = arith.addf %481, %482 : vector<2x32xf32>
    %484 = math.tanh %483 : vector<2x32xf32>
    %485 = arith.mulf %480, %484 : vector<2x32xf32>
    %c3_283 = arith.constant 3 : index
    %c0_284 = arith.constant 0 : index
    %c0_285 = arith.constant 0 : index
    %486 = vector.load %arg5[%c3_283, %c0_284, %c0_285] : memref<4x2x32xf32, #tpu.memory_space<vmem>>, vector<1x2x32xf32>
    %487 = vector.shape_cast %486 : vector<1x2x32xf32> to vector<2x32xf32>
    %488 = vector.shape_cast %485 : vector<2x32xf32> to vector<1x2x32xf32>
    tpu.vector_store %arg5[%c3_283, %c0_284, %c0_285], %488 {strides = array<i32>} : memref<4x2x32xf32, #tpu.memory_space<vmem>>, vector<1x2x32xf32>,
    %c0_286 = arith.constant 0 : index
    %c0_287 = arith.constant 0 : index
    %c0_288 = arith.constant 0 : index
    %489 = vector.load %arg5[%c0_286, %c0_287, %c0_288] : memref<4x2x32xf32, #tpu.memory_space<vmem>>, vector<4x2x32xf32>
    %c12_289 = arith.constant 12 : index
    %c0_290 = arith.constant 0 : index
    %c0_291 = arith.constant 0 : index
    %490 = vector.load %arg4[%c12_289, %c0_290, %c0_291] : memref<16x2x32xf32, #tpu.memory_space<vmem>>, vector<4x2x32xf32>
    tpu.vector_store %arg4[%c12_289, %c0_290, %c0_291], %489 {strides = array<i32>} : memref<16x2x32xf32, #tpu.memory_space<vmem>>, vector<4x2x32xf32>,
    %c0_292 = arith.constant 0 : index
    %c0_293 = arith.constant 0 : index
    %491 = vector.load %arg7[%c0_292, %c0_293] : memref<2x32xf32, #tpu.memory_space<vmem>>, vector<2x32xf32>
    tpu.vector_store %arg7[%c0_292, %c0_293], %485 {strides = array<i32>} : memref<2x32xf32, #tpu.memory_space<vmem>>, vector<2x32xf32>,
    %c0_294 = arith.constant 0 : index
    %c0_295 = arith.constant 0 : index
    %492 = vector.load %arg8[%c0_294, %c0_295] : memref<2x32xf32, #tpu.memory_space<vmem>>, vector<2x32xf32>
    tpu.vector_store %arg8[%c0_294, %c0_295], %483 {strides = array<i32>} : memref<2x32xf32, #tpu.memory_space<vmem>>, vector<2x32xf32>,
    return
  }
  func.func @transform_0(%arg0: i32) -> (i32, i32, i32) {
    %c0_i32 = arith.constant 0 : i32
    %c0_i32_0 = arith.constant 0 : i32
    %c0_i32_1 = arith.constant 0 : i32
    return %arg0, %c0_i32, %c0_i32_0 : i32, i32, i32
  }
  func.func @transform_1(%arg0: i32) -> (i32, i32) {
    %c0_i32 = arith.constant 0 : i32
    %c0_i32_0 = arith.constant 0 : i32
    %c0_i32_1 = arith.constant 0 : i32
    return %c0_i32, %c0_i32_0 : i32, i32
  }
  func.func @transform_2(%arg0: i32) -> (i32, i32) {
    %c0_i32 = arith.constant 0 : i32
    %c0_i32_0 = arith.constant 0 : i32
    %c0_i32_1 = arith.constant 0 : i32
    return %c0_i32, %c0_i32_0 : i32, i32
  }
  func.func @transform_3(%arg0: i32) -> (i32, i32, i32) {
    %c0_i32 = arith.constant 0 : i32
    %c0_i32_0 = arith.constant 0 : i32
    %c0_i32_1 = arith.constant 0 : i32
    return %arg0, %c0_i32, %c0_i32_0 : i32, i32, i32
  }
}

</mosaic_0001>

<bundles_post_ra>
// kernel: lstm2d_forward.1
= control target key start
LH: loop header
LB: loop body
LE: loop exit
PB: predicated region body
PF: predicated region fallthrough
CT: control target
= control target key end

     0   :  { %vm18_vm0 = vcmask 254976   ;;  %v3781_v0 = vmov 0.0|0.0   ;;  %vm3782_vm1 = vmmov 0   ;;  %v3783_v4 = vmov 0.0   ;;  %s3785_s30 = smov 64   ;;  %s3786_s4 = smov 32   ;;  %s4323_s2 = inlined_call_operand.vmem [shape: f32[32,128], index: 2, kind: input, shape index: {}]   ;;  %s4324_s1 = inlined_call_operand.vmem [shape: f32[32,128], index: 1, kind: input, shape index: {}]   ;;  %s4325_s0 = inlined_call_operand.vmem [shape: f32[16,2,128], index: 0, kind: input, shape index: {}]   ;;  %s4326_s3 = inlined_call_operand.vmem [shape: f32[16,2,32], index: 3, kind: output, shape index: {}]  }
   0x1   :  { %3518 = vmatprep.subr.bf16.mxu0 %v3781_v0  ;;  %v29_v1 = vld [vmem:[%s4323_s2] sm:$0xff]  ;;  %v30_v2 = vld [vmem:[%s4323_s2 + $0x8] sm:$0xff]  ;;  %v31_v3 = vld [vmem:[%s4323_s2 + $0x10] sm:$0xff]  ;;  %3174 = vmatprep.mubr.msk.f32.mxu0 %vm3782_vm1, %v3783_v4  ;;  %19 = vst.msk [vmem:[#allocation2] sm:$0x3] %vm18_vm0, %v3783_v4  ;;  %vm44_vm2 = vcmask 261120   ;;  %v33_v21 = vlaneseq }
   0x2   :  { %20 = vst.msk [vmem:[#allocation2 + $0x2] sm:$0x3] %vm18_vm0, %v3783_v4  ;;  %21 = vst.msk [vmem:[#allocation2 + $0x4] sm:$0x3] %vm18_vm0, %v3783_v4  ;;  %v3832_v5 = vpack.c.bf16 %v30_v2, %v29_v1  ;;  %v32_v6 = vld [vmem:[%s4323_s2 + $0x18] sm:$0xff]  ;;  %3524 = vmatprep.subr.bf16.mxu1 %v3781_v0  ;;  %3185 = vmatprep.mubr.msk.f32.mxu1 %vm3782_vm1, %v3783_v4  ;;  %v25_v9 = vld [vmem:[%s4324_s1] sm:$0xff] }
   0x3   :  { %22 = vst.msk [vmem:[#allocation2 + $0x6] sm:$0x3] %vm18_vm0, %v3783_v4  ;;  %23 = vst.msk [vmem:[#allocation4] sm:$0x3] %vm18_vm0, %v3783_v4  ;;  %v3841_v7 = vpack.c.bf16 %v32_v6, %v31_v3  ;;  %v26_v10 = vld [vmem:[%s4324_s1 + $0x8] sm:$0xff]  ;;  %v27_v13 = vld [vmem:[%s4324_s1 + $0x10] sm:$0xff] }
   0x4   :  { %24 = vst.msk [vmem:[#allocation5] sm:$0x3] %vm18_vm0, %v3783_v4  ;;  %3520 = vmatpush3.bf16.msra.mxu0 %v3832_v5  ;;  %3526 = vmatpush3.bf16.msra.mxu1 %v3832_v5  ;;  %v3862_v12 = vpack.c.bf16 %v26_v10, %v25_v9  ;;  %v28_v14 = vld [vmem:[%s4324_s1 + $0x18] sm:$0xff]  ;;  %v42_v17 = vld [vmem:[%s4325_s0] sm:$0x3]  ;;  %v34_v23 = vand.u32 127, %v33_v21 }
   0x5   :  { %3521 = vmatprep.subr.bf16.mxu0 %v3781_v0  ;;  %3527 = vmatprep.subr.bf16.mxu1 %v3781_v0  ;;  %v3873_v15 = vpack.c.bf16 %v28_v14, %v27_v13  ;;  %v2950_v22 = vld [vmem:[%s4325_s0 + $0x4] sm:$0x3]  ;;  %v3784_v27 = vmov 0.5   ;;  %v2948_v50 = vld [vmem:[%s4325_s0 + $0x2] sm:$0x3]  ;;  %s3787_s8 = smov 96  }
   0x6   :  { %vm35_vm3 = vcmp.ge.s32.totalorder %v34_v23, 64  ;;  %vm36_vm4 = vcmp.lt.s32.totalorder %v34_v23, 96  ;;  %v2952_v54 = vld [vmem:[%s4325_s0 + $0x6] sm:$0x3] }
   0x7   :  { %vm37_vm5 = vmand %vm35_vm3, %vm36_vm4 }
   0x8   :  { %3523 = vmatpush3.bf16.msra.mxu0 %v3841_v7  ;;  %v43_v8 = vld [vmem:[#allocation2] sm:$0x3]  ;;  %3529 = vmatpush3.bf16.msra.mxu1 %v3841_v7  ;;  %v3893_v28 = vsel %vm37_vm5, 1.0, %v3784_v27  ;;  %v3896_v35 = vsel %vm37_vm5, 0.0, %v3784_v27 }
   0x9   :  { %3530 = vmatprep.subr.bf16.mxu0 %v3781_v0  ;;  %3536 = vmatprep.subr.bf16.mxu1 %v3781_v0  ;;  %v203_v11 = vld [vmem:[#allocation2 + $0x4] sm:$0x3]  ;;  %v123_v45 = vld [vmem:[#allocation2 + $0x2] sm:$0x3] }
   0xa   :  { %v40_v16 = vld [vmem:[#allocation4] sm:$0x3]  ;;  %v283_v46 = vld [vmem:[#allocation2 + $0x6] sm:$0x3] }
   0xb   :  { %3175 = vmatmul.mubr.msk.f32.vlgmr.msra.gmra.mrb[0].mxu0 %vm44_vm2, %v43_v8  ;;  %v41_v38 = vld [vmem:[#allocation5] sm:$0x3]  ;;  %3186 = vmatmul.mubr.msk.f32.vlgmr.msra.gmra.mrb[0].mxu1 %vm44_vm2, %v123_v45 }
   0xc   :  { %3532 = vmatpush3.bf16.msra.mxu0 %v3832_v5  ;;  %3196 = vmatprep.mubr.msk.f32.mxu0 %vm3782_vm1, %v3783_v4 }
   0xd   :  { %3533 = vmatprep.subr.bf16.mxu0 %v3781_v0  ;;  %3538 = vmatpush3.bf16.msra.mxu1 %v3832_v5 }
   0xe   :  { %3207 = vmatprep.mubr.msk.f32.mxu1 %vm3782_vm1, %v3783_v4  ;;  %3539 = vmatprep.subr.bf16.mxu1 %v3781_v0 }
  0x10   :  { %3535 = vmatpush3.bf16.msra.mxu0 %v3841_v7 }
  0x11   :  { %3542 = vmatprep.subr.bf16.mxu0 %v3781_v0  ;;  %3541 = vmatpush3.bf16.msra.mxu1 %v3841_v7 }
  0x12   :  { %3548 = vmatprep.subr.bf16.mxu1 %v3781_v0 }
  0x13   :  { %3197 = vmatmul.mubr.msk.f32.vlgmr.msra.gmra.mrb[2].mxu0 %vm44_vm2, %v203_v11 }
  0x14   :  { %3544 = vmatpush3.bf16.msra.mxu0 %v3862_v12  ;;  %3218 = vmatprep.mubr.msk.f32.mxu0 %vm3782_vm1, %v3783_v4 }
  0x15   :  { %3545 = vmatprep.subr.bf16.mxu0 %v3781_v0  ;;  %3208 = vmatmul.mubr.msk.f32.vlgmr.msra.gmra.mrb[2].mxu1 %vm44_vm2, %v283_v46 }
  0x16   :  { %3550 = vmatpush3.bf16.msra.mxu1 %v3862_v12  ;;  %3229 = vmatprep.mubr.msk.f32.mxu1 %vm3782_vm1, %v3783_v4 }
  0x17   :  { %3551 = vmatprep.subr.bf16.mxu1 %v3781_v0 }
  0x18   :  { %3547 = vmatpush3.bf16.msra.mxu0 %v3873_v15 }
  0x19   :  { %3554 = vmatprep.subr.bf16.mxu0 %v3781_v0 }
  0x1a   :  { %3553 = vmatpush3.bf16.msra.mxu1 %v3873_v15 }
  0x1b   :  { %3219 = vmatmul.mubr.msk.f32.vlgmr.msra.gmra.mrb[4].mxu0 %vm44_vm2, %v40_v16  ;;  %3560 = vmatprep.subr.bf16.mxu1 %v3781_v0 }
  0x1c   :  { %3556 = vmatpush3.bf16.msra.mxu0 %v3862_v12  ;;  %3240 = vmatprep.mubr.msk.f32.mxu0 %vm3782_vm1, %v3783_v4 }
  0x1d   :  { %3557 = vmatprep.subr.bf16.mxu0 %v3781_v0 }
  0x20   :  { %3559 = vmatpush3.bf16.msra.mxu0 %v3873_v15 }
  0x21   :  { %3566 = vmatprep.subr.bf16.mxu0 %v3781_v0 }
  0xde   :  { %v114_v18 = vpop.f32.mrb[0].mxu0  ;;  %v193_v51 = vpop.f32.mrb[0].mxu1 }
  0xdf   :  { %v118_v19 = vadd.f32 %v114_v18, %v42_v17  ;;  %v3176_v20 = vpop.f32.mrb[1].mxu0  ;;  %v197_v52 = vadd.f32 %v2948_v50, %v193_v51  ;;  %v3187_v53 = vpop.f32.mrb[1].mxu1 }
  0xe0   :  { %v2962_v53 = vld [vmem:[%s4325_s0 + $0xc] sm:$0x3] }
  0xe1   :  { %119 = vst [vmem:[#allocation3] sm:$0x3] %v118_v19  ;;  %199 = vst [vmem:[#allocation3 + $0x2] sm:$0x3] %v197_v52  ;;  %v2960_v52 = vld [vmem:[%s4325_s0 + $0xa] sm:$0x3] }
  0xe6   :  { %v273_v24 = vpop.f32.mrb[2].mxu0 }
  0xe7   :  { %v277_v25 = vadd.f32 %v2950_v22, %v273_v24  ;;  %v3198_v26 = vpop.f32.mrb[3].mxu0 }
  0xe8   :  { %v360_v29 = vld [vmem:[#allocation3] sm:$0x3]  ;;  %v353_v55 = vpop.f32.mrb[2].mxu1  ;;  %v466_v60 = vld [vmem:[#allocation3 + $0x2] sm:$0x3] }
  0xe9   :  { %279 = vst [vmem:[#allocation3 + $0x4] sm:$0x3] %v277_v25  ;;  %v357_v56 = vadd.f32 %v2952_v54, %v353_v55  ;;  %v3209_v57 = vpop.f32.mrb[3].mxu1  ;;  %v2958_v26 = vld [vmem:[%s4325_s0 + $0x8] sm:$0x3] }
  0xeb   :  { %359 = vst [vmem:[#allocation3 + $0x6] sm:$0x3] %v357_v56 }
  0xee   :  { %v430_v30 = vpop.f32.mrb[4].mxu0 }
  0xef   :  { %v434_v31 = vadd.f32 %v430_v30, %v360_v29  ;;  %v3220_v32 = vpop.f32.mrb[5].mxu0 }
  0xf0   :  { %v566_v21 = vld [vmem:[#allocation3 + $0x4] sm:$0x3] }
  0xf1   :  { %v435_v33 = vmul.f32 %v434_v31, %v3893_v28 }
  0xf3   :  { %3717 = vtanh.f32 %v435_v33 }
  0xfd   :  { %v3718_v34 = vpop.eup %3717 }
  0xfe   :  { %v437_v36 = vmul.f32 %v3718_v34, %v3893_v28 }
 0x100   :  { %v438_v37 = vadd.f32 %v437_v36, %v3896_v35 }
 0x102   :  { %445 = vrot.lane.b32.xlu0 %v438_v37, %s3785_s30 }
 0x106   :  { %440 = vrot.lane.b32.xlu0 %v41_v38, %s3786_s4 }
 0x174   :  { %v446_v39 = vpop.permute.xlu0 %445 }
 0x175   :  { %v448_v40 = vmul.f32 %v446_v39, %v438_v37 }
 0x177   :  { %450 = vrot.lane.b32.xlu1 %v448_v40, %s3786_s4 }
 0x178   :  { %v441_v41 = vpop.permute.xlu0 %440 }
 0x179   :  { %v443_v42 = vmul.f32 %v441_v41, %v438_v37 }
 0x1e9   :  { %v451_v43 = vpop.permute.xlu1 %450 }
 0x1ea   :  { %v453_v44 = vadd.f32 %v451_v43, %v443_v42 }
 0x1ec   :  { %3719 = vtanh.f32 %v453_v44 }
 0x1f6   :  { %v3720_v47 = vpop.eup %3719 }
 0x1f7   :  { %456 = vrot.lane.b32.xlu1 %v3720_v47, %s3785_s30  ;;  %v666_v47 = vld [vmem:[#allocation3 + $0x6] sm:$0x3] }
 0x269   :  { %v457_v48 = vpop.permute.xlu1 %456 }
 0x26a   :  { %v459_v49 = vmul.f32 %v457_v48, %v438_v37 }
 0x26c   :  { %461 = vrot.lane.b32.xlu0 %v459_v49, %s3786_s4 }
 0x2de   :  { %v462_v58 = vpop.permute.xlu0 %461 }
 0x2df   :  { %465 = vst.msk [vmem:[#allocation2] sm:$0x3] %vm18_vm0, %v462_v58  ;;  %3230 = vmatmul.mubr.msk.f32.vlgmr.msra.gmra.mrb[4].mxu1 %vm44_vm2, %v462_v58 }
 0x2e0   :  { %3562 = vmatpush3.bf16.msra.mxu1 %v3862_v12  ;;  %3251 = vmatprep.mubr.msk.f32.mxu1 %vm3782_vm1, %v3783_v4 }
 0x2e1   :  { %3563 = vmatprep.subr.bf16.mxu1 %v3781_v0 }
 0x2e4   :  { %3565 = vmatpush3.bf16.msra.mxu1 %v3873_v15 }
 0x2e5   :  { %3572 = vmatprep.subr.bf16.mxu1 %v3781_v0 }
 0x2e6   :  { %v766_v59 = vld [vmem:[#allocation2] sm:$0x3] }
 0x2e7   :  { %770 = vst.msk [vmem:[%s4326_s3] sm:$0x3] %vm18_vm0, %v766_v59  ;;  %v776_v19 = vld [vmem:[#allocation2] sm:$0x3] }
 0x3b2   :  { %v535_v61 = vpop.f32.mrb[4].mxu1 }
 0x3b3   :  { %v539_v62 = vadd.f32 %v535_v61, %v466_v60  ;;  %v3231_v63 = vpop.f32.mrb[5].mxu1 }
 0x3b5   :  { %v540_v1 = vmul.f32 %v539_v62, %v3893_v28 }
 0x3b7   :  { %3721 = vtanh.f32 %v540_v1 }
 0x3c1   :  { %v3722_v2 = vpop.eup %3721 }
 0x3c2   :  { %v542_v3 = vmul.f32 %v3722_v2, %v3893_v28 }
 0x3c4   :  { %v543_v6 = vadd.f32 %v542_v3, %v3896_v35 }
 0x3c6   :  { %546 = vrot.lane.b32.xlu1 %v543_v6, %s3785_s30  ;;  %v544_v10 = vmul.f32 %v543_v6, %v453_v44 }
 0x438   :  { %v547_v8 = vpop.permute.xlu1 %546 }
 0x439   :  { %v549_v9 = vmul.f32 %v547_v8, %v543_v6 }
 0x43b   :  { %551 = vrot.lane.b32.xlu0 %v549_v9, %s3786_s4 }
 0x4ad   :  { %v552_v11 = vpop.permute.xlu0 %551 }
 0x4ae   :  { %v554_v13 = vadd.f32 %v552_v11, %v544_v10 }
 0x4b0   :  { %3723 = vtanh.f32 %v554_v13 }
 0x4ba   :  { %v3724_v14 = vpop.eup %3723 }
 0x4bb   :  { %557 = vrot.lane.b32.xlu1 %v3724_v14, %s3785_s30 }
 0x52d   :  { %v558_v16 = vpop.permute.xlu1 %557 }
 0x52e   :  { %v560_v17 = vmul.f32 %v558_v16, %v543_v6 }
 0x530   :  { %562 = vrot.lane.b32.xlu0 %v560_v17, %s3786_s4 }
 0x5a2   :  { %v563_v18 = vpop.permute.xlu0 %562 }
 0x5a3   :  { %565 = vst.msk [vmem:[#allocation2 + $0x2] sm:$0x3] %vm18_vm0, %v563_v18  ;;  %3241 = vmatmul.mubr.msk.f32.vlgmr.msra.gmra.mrb[6].mxu0 %vm44_vm2, %v563_v18 }
 0x5a4   :  { %3568 = vmatpush3.bf16.msra.mxu0 %v3832_v5  ;;  %3262 = vmatprep.mubr.msk.f32.mxu0 %vm3782_vm1, %v3783_v4 }
 0x5a5   :  { %3569 = vmatprep.subr.bf16.mxu0 %v3781_v0 }
 0x5a8   :  { %3571 = vmatpush3.bf16.msra.mxu0 %v3841_v7 }
 0x5a9   :  { %3578 = vmatprep.subr.bf16.mxu0 %v3781_v0 }
 0x5aa   :  { %v767_v20 = vld [vmem:[#allocation2 + $0x2] sm:$0x3] }
 0x5ab   :  { %3263 = vmatmul.mubr.msk.f32.vlgmr.msra.gmra.mrb[8].mxu0 %vm44_vm2, %v776_v19  ;;  %771 = vst.msk [vmem:[%s4326_s3 + $0x2] sm:$0x3] %vm18_vm0, %v767_v20  ;;  %v854_v44 = vld [vmem:[#allocation2 + $0x2] sm:$0x3] }
 0x5ac   :  { %3580 = vmatpush3.bf16.msra.mxu0 %v3832_v5  ;;  %3284 = vmatprep.mubr.msk.f32.mxu0 %vm3782_vm1, %v3783_v4 }
 0x5ad   :  { %3581 = vmatprep.subr.bf16.mxu0 %v3781_v0 }
 0x5b0   :  { %3583 = vmatpush3.bf16.msra.mxu0 %v3841_v7 }
 0x5b1   :  { %3590 = vmatprep.subr.bf16.mxu0 %v3781_v0 }
 0x676   :  { %v635_v22 = vpop.f32.mrb[6].mxu0 }
 0x677   :  { %v639_v23 = vadd.f32 %v635_v22, %v566_v21  ;;  %v3242_v24 = vpop.f32.mrb[7].mxu0  ;;  %v2964_v21 = vld [vmem:[%s4325_s0 + $0xe] sm:$0x3] }
 0x679   :  { %v640_v25 = vmul.f32 %v639_v23, %v3893_v28 }
 0x67b   :  { %3725 = vtanh.f32 %v640_v25 }
 0x67e   :  { %v846_v27 = vpop.f32.mrb[8].mxu0 }
 0x67f   :  { %v850_v29 = vadd.f32 %v2958_v26, %v846_v27  ;;  %v3264_v30 = vpop.f32.mrb[9].mxu0 }
 0x681   :  { %851 = vst [vmem:[#allocation3] sm:$0x3] %v850_v29 }
 0x685   :  { %v3726_v31 = vpop.eup %3725 }
 0x686   :  { %v642_v32 = vmul.f32 %v3726_v31, %v3893_v28 }
 0x688   :  { %v643_v33 = vadd.f32 %v642_v32, %v3896_v35  ;;  %v1086_v16 = vld [vmem:[#allocation3] sm:$0x3] }
 0x68a   :  { %646 = vrot.lane.b32.xlu1 %v643_v33, %s3785_s30  ;;  %v644_v37 = vmul.f32 %v643_v33, %v554_v13 }
 0x6fc   :  { %v647_v34 = vpop.permute.xlu1 %646 }
 0x6fd   :  { %v649_v36 = vmul.f32 %v647_v34, %v643_v33 }
 0x6ff   :  { %651 = vrot.lane.b32.xlu0 %v649_v36, %s3786_s4 }
 0x771   :  { %v652_v38 = vpop.permute.xlu0 %651 }
 0x772   :  { %v654_v39 = vadd.f32 %v652_v38, %v644_v37 }
 0x774   :  { %3727 = vtanh.f32 %v654_v39 }
 0x77e   :  { %v3728_v40 = vpop.eup %3727 }
 0x77f   :  { %657 = vrot.lane.b32.xlu1 %v3728_v40, %s3785_s30 }
 0x7f1   :  { %v658_v41 = vpop.permute.xlu1 %657 }
 0x7f2   :  { %v660_v42 = vmul.f32 %v658_v41, %v643_v33 }
 0x7f4   :  { %662 = vrot.lane.b32.xlu0 %v660_v42, %s3786_s4 }
 0x866   :  { %v663_v43 = vpop.permute.xlu0 %662 }
 0x867   :  { %665 = vst.msk [vmem:[#allocation2 + $0x4] sm:$0x3] %vm18_vm0, %v663_v43  ;;  %3252 = vmatmul.mubr.msk.f32.vlgmr.msra.gmra.mrb[6].mxu1 %vm44_vm2, %v663_v43 }
 0x868   :  { %3574 = vmatpush3.bf16.msra.mxu1 %v3832_v5  ;;  %3273 = vmatprep.mubr.msk.f32.mxu1 %vm3782_vm1, %v3783_v4 }
 0x869   :  { %3575 = vmatprep.subr.bf16.mxu1 %v3781_v0 }
 0x86c   :  { %3577 = vmatpush3.bf16.msra.mxu1 %v3841_v7 }
 0x86d   :  { %3584 = vmatprep.subr.bf16.mxu1 %v3781_v0 }
 0x86e   :  { %v932_v45 = vld [vmem:[#allocation2 + $0x4] sm:$0x3] }
 0x86f   :  { %v768_v46 = vld [vmem:[#allocation2 + $0x4] sm:$0x3]  ;;  %3274 = vmatmul.mubr.msk.f32.vlgmr.msra.gmra.mrb[8].mxu1 %vm44_vm2, %v854_v44  ;;  %3285 = vmatmul.mubr.msk.f32.vlgmr.msra.gmra.mrb[10].mxu0 %vm44_vm2, %v932_v45 }
 0x870   :  { %772 = vst.msk [vmem:[%s4326_s3 + $0x4] sm:$0x3] %vm18_vm0, %v768_v46  ;;  %3592 = vmatpush3.bf16.msra.mxu0 %v3862_v12  ;;  %3306 = vmatprep.mubr.msk.f32.mxu0 %vm3782_vm1, %v3783_v4 }
 0x871   :  { %3593 = vmatprep.subr.bf16.mxu0 %v3781_v0  ;;  %3586 = vmatpush3.bf16.msra.mxu1 %v3832_v5 }
 0x872   :  { %3587 = vmatprep.subr.bf16.mxu1 %v3781_v0  ;;  %3295 = vmatprep.mubr.msk.f32.mxu1 %vm3782_vm1, %v3783_v4 }
 0x874   :  { %3595 = vmatpush3.bf16.msra.mxu0 %v3873_v15 }
 0x875   :  { %3589 = vmatpush3.bf16.msra.mxu1 %v3841_v7  ;;  %3602 = vmatprep.subr.bf16.mxu0 %v3781_v0 }
 0x876   :  { %3596 = vmatprep.subr.bf16.mxu1 %v3781_v0 }
 0x93a   :  { %v735_v48 = vpop.f32.mrb[6].mxu1 }
 0x93b   :  { %v739_v49 = vadd.f32 %v735_v48, %v666_v47  ;;  %v3253_v50 = vpop.f32.mrb[7].mxu1 }
 0x93d   :  { %v740_v51 = vmul.f32 %v739_v49, %v3893_v28 }
 0x93f   :  { %3729 = vtanh.f32 %v740_v51 }
 0x942   :  { %v924_v54 = vpop.f32.mrb[8].mxu1  ;;  %v1002_v55 = vpop.f32.mrb[10].mxu0 }
 0x943   :  { %v928_v56 = vadd.f32 %v2960_v52, %v924_v54  ;;  %v3275_v57 = vpop.f32.mrb[9].mxu1  ;;  %v1006_v58 = vadd.f32 %v2962_v53, %v1002_v55  ;;  %v3286_v59 = vpop.f32.mrb[11].mxu0 }
 0x945   :  { %929 = vst [vmem:[#allocation3 + $0x2] sm:$0x3] %v928_v56  ;;  %1007 = vst [vmem:[#allocation3 + $0x4] sm:$0x3] %v1006_v58 }
 0x949   :  { %v3730_v60 = vpop.eup %3729 }
 0x94a   :  { %v742_v61 = vmul.f32 %v3730_v60, %v3893_v28 }
 0x94c   :  { %v743_v62 = vadd.f32 %v742_v61, %v3896_v35  ;;  %v1186_v40 = vld [vmem:[#allocation3 + $0x2] sm:$0x3]  ;;  %v1286_v59 = vld [vmem:[#allocation3 + $0x4] sm:$0x3] }
 0x94e   :  { %746 = vrot.lane.b32.xlu1 %v743_v62, %s3785_s30  ;;  %v744_v2 = vmul.f32 %v743_v62, %v654_v39 }
 0x9c0   :  { %v747_v63 = vpop.permute.xlu1 %746 }
 0x9c1   :  { %v749_v1 = vmul.f32 %v747_v63, %v743_v62 }
 0x9c3   :  { %751 = vrot.lane.b32.xlu0 %v749_v1, %s3786_s4  ;;  %v2974_v1 = vld [vmem:[%s4325_s0 + $0x10] sm:$0x3] }
 0xa35   :  { %v752_v3 = vpop.permute.xlu0 %751 }
 0xa36   :  { %v754_v6 = vadd.f32 %v752_v3, %v744_v2 }
 0xa38   :  { %3731 = vtanh.f32 %v754_v6 }
 0xa42   :  { %v3732_v8 = vpop.eup %3731 }
 0xa43   :  { %757 = vrot.lane.b32.xlu1 %v3732_v8, %s3785_s30 }
 0xab5   :  { %v758_v9 = vpop.permute.xlu1 %757 }
 0xab6   :  { %v760_v10 = vmul.f32 %v758_v9, %v743_v62 }
 0xab8   :  { %762 = vrot.lane.b32.xlu0 %v760_v10, %s3786_s4 }
 0xb2a   :  { %v763_v11 = vpop.permute.xlu0 %762 }
 0xb2b   :  { %765 = vst.msk [vmem:[#allocation2 + $0x6] sm:$0x3] %vm18_vm0, %v763_v11  ;;  %3307 = vmatmul.mubr.msk.f32.vlgmr.msra.gmra.mrb[12].mxu0 %vm44_vm2, %v763_v11 }
 0xb2c   :  { %3604 = vmatpush3.bf16.msra.mxu0 %v3862_v12  ;;  %3328 = vmatprep.mubr.msk.f32.mxu0 %vm3782_vm1, %v3783_v4 }
 0xb2d   :  { %3605 = vmatprep.subr.bf16.mxu0 %v3781_v0 }
 0xb30   :  { %3607 = vmatpush3.bf16.msra.mxu0 %v3873_v15 }
 0xb31   :  { %3614 = vmatprep.subr.bf16.mxu0 %v3781_v0 }
 0xb32   :  { %v1010_v13 = vld [vmem:[#allocation2 + $0x6] sm:$0x3] }
 0xb33   :  { %v769_v14 = vld [vmem:[#allocation2 + $0x6] sm:$0x3]  ;;  %3296 = vmatmul.mubr.msk.f32.vlgmr.msra.gmra.mrb[10].mxu1 %vm44_vm2, %v1010_v13 }
 0xb34   :  { %773 = vst.msk [vmem:[%s4326_s3 + $0x6] sm:$0x3] %vm18_vm0, %v769_v14  ;;  %3598 = vmatpush3.bf16.msra.mxu1 %v3862_v12  ;;  %3317 = vmatprep.mubr.msk.f32.mxu1 %vm3782_vm1, %v3783_v4 }
 0xb35   :  { %3599 = vmatprep.subr.bf16.mxu1 %v3781_v0 }
 0xb38   :  { %3601 = vmatpush3.bf16.msra.mxu1 %v3873_v15 }
 0xb39   :  { %3608 = vmatprep.subr.bf16.mxu1 %v3781_v0 }
 0xbfe   :  { %v1155_v17 = vpop.f32.mrb[12].mxu0 }
 0xbff   :  { %v1159_v18 = vadd.f32 %v1155_v17, %v1086_v16  ;;  %v3308_v19 = vpop.f32.mrb[13].mxu0 }
 0xc01   :  { %v1160_v20 = vmul.f32 %v1159_v18, %v3893_v28 }
 0xc03   :  { %3733 = vtanh.f32 %v1160_v20 }
 0xc06   :  { %v1080_v22 = vpop.f32.mrb[10].mxu1 }
 0xc07   :  { %v1084_v23 = vadd.f32 %v2964_v21, %v1080_v22  ;;  %v3297_v24 = vpop.f32.mrb[11].mxu1 }
 0xc09   :  { %1085 = vst [vmem:[#allocation3 + $0x6] sm:$0x3] %v1084_v23 }
 0xc0d   :  { %v3734_v25 = vpop.eup %3733 }
 0xc0e   :  { %v1162_v26 = vmul.f32 %v3734_v25, %v3893_v28 }
 0xc10   :  { %v1163_v27 = vadd.f32 %v1162_v26, %v3896_v35  ;;  %v1386_v25 = vld [vmem:[#allocation3 + $0x6] sm:$0x3] }
 0xc12   :  { %1166 = vrot.lane.b32.xlu1 %v1163_v27, %s3785_s30  ;;  %v1164_v31 = vmul.f32 %v1163_v27, %v754_v6 }
 0xc84   :  { %v1167_v29 = vpop.permute.xlu1 %1166 }
 0xc85   :  { %v1169_v30 = vmul.f32 %v1167_v29, %v1163_v27 }
 0xc87   :  { %1171 = vrot.lane.b32.xlu0 %v1169_v30, %s3786_s4 }
 0xcf9   :  { %v1172_v32 = vpop.permute.xlu0 %1171 }
 0xcfa   :  { %v1174_v33 = vadd.f32 %v1172_v32, %v1164_v31  ;;  %v2976_v31 = vld [vmem:[%s4325_s0 + $0x12] sm:$0x3]  ;;  %v2978_v32 = vld [vmem:[%s4325_s0 + $0x14] sm:$0x3] }
 0xcfc   :  { %3735 = vtanh.f32 %v1174_v33 }
 0xd06   :  { %v3736_v34 = vpop.eup %3735 }
 0xd07   :  { %1177 = vrot.lane.b32.xlu1 %v3736_v34, %s3785_s30 }
 0xd79   :  { %v1178_v36 = vpop.permute.xlu1 %1177 }
 0xd7a   :  { %v1180_v37 = vmul.f32 %v1178_v36, %v1163_v27 }
 0xd7c   :  { %1182 = vrot.lane.b32.xlu0 %v1180_v37, %s3786_s4 }
 0xdee   :  { %v1183_v38 = vpop.permute.xlu0 %1182 }
 0xdef   :  { %1185 = vst.msk [vmem:[#allocation2] sm:$0x3] %vm18_vm0, %v1183_v38  ;;  %3318 = vmatmul.mubr.msk.f32.vlgmr.msra.gmra.mrb[12].mxu1 %vm44_vm2, %v1183_v38 }
 0xdf0   :  { %3610 = vmatpush3.bf16.msra.mxu1 %v3862_v12  ;;  %3339 = vmatprep.mubr.msk.f32.mxu1 %vm3782_vm1, %v3783_v4 }
 0xdf1   :  { %3611 = vmatprep.subr.bf16.mxu1 %v3781_v0 }
 0xdf4   :  { %3613 = vmatpush3.bf16.msra.mxu1 %v3873_v15 }
 0xdf5   :  { %3620 = vmatprep.subr.bf16.mxu1 %v3781_v0 }
 0xdf6   :  { %v1486_v39 = vld [vmem:[#allocation2] sm:$0x3] }
 0xdf7   :  { %2970 = vst.msk [vmem:[%s4326_s3 + $0x8] sm:$0x3] %vm18_vm0, %v1486_v39  ;;  %v1497_v57 = vld [vmem:[#allocation2] sm:$0x3] }
 0xec2   :  { %v1255_v41 = vpop.f32.mrb[12].mxu1 }
 0xec3   :  { %v1259_v42 = vadd.f32 %v1255_v41, %v1186_v40  ;;  %v3319_v43 = vpop.f32.mrb[13].mxu1 }
 0xec5   :  { %v1260_v44 = vmul.f32 %v1259_v42, %v3893_v28 }
 0xec7   :  { %3737 = vtanh.f32 %v1260_v44 }
 0xed1   :  { %v3738_v45 = vpop.eup %3737 }
 0xed2   :  { %v1262_v46 = vmul.f32 %v3738_v45, %v3893_v28 }
 0xed4   :  { %v1263_v47 = vadd.f32 %v1262_v46, %v3896_v35 }
 0xed6   :  { %1266 = vrot.lane.b32.xlu1 %v1263_v47, %s3785_s30  ;;  %v1264_v50 = vmul.f32 %v1263_v47, %v1174_v33 }
 0xf48   :  { %v1267_v48 = vpop.permute.xlu1 %1266 }
 0xf49   :  { %v1269_v49 = vmul.f32 %v1267_v48, %v1263_v47 }
 0xf4b   :  { %1271 = vrot.lane.b32.xlu0 %v1269_v49, %s3786_s4 }
 0xfbd   :  { %v1272_v51 = vpop.permute.xlu0 %1271 }
 0xfbe   :  { %v1274_v52 = vadd.f32 %v1272_v51, %v1264_v50 }
 0xfc0   :  { %3739 = vtanh.f32 %v1274_v52 }
 0xfca   :  { %v3740_v53 = vpop.eup %3739 }
 0xfcb   :  { %1277 = vrot.lane.b32.xlu1 %v3740_v53, %s3785_s30 }
0x103d   :  { %v1278_v54 = vpop.permute.xlu1 %1277 }
0x103e   :  { %v1280_v55 = vmul.f32 %v1278_v54, %v1263_v47 }
0x1040   :  { %1282 = vrot.lane.b32.xlu0 %v1280_v55, %s3786_s4 }
0x10b2   :  { %v1283_v56 = vpop.permute.xlu0 %1282 }
0x10b3   :  { %1285 = vst.msk [vmem:[#allocation2 + $0x2] sm:$0x3] %vm18_vm0, %v1283_v56  ;;  %3329 = vmatmul.mubr.msk.f32.vlgmr.msra.gmra.mrb[14].mxu0 %vm44_vm2, %v1283_v56 }
0x10b4   :  { %3616 = vmatpush3.bf16.msra.mxu0 %v3832_v5  ;;  %3350 = vmatprep.mubr.msk.f32.mxu0 %vm3782_vm1, %v3783_v4 }
0x10b5   :  { %3617 = vmatprep.subr.bf16.mxu0 %v3781_v0 }
0x10b8   :  { %3619 = vmatpush3.bf16.msra.mxu0 %v3841_v7 }
0x10b9   :  { %3626 = vmatprep.subr.bf16.mxu0 %v3781_v0 }
0x10ba   :  { %v1487_v58 = vld [vmem:[#allocation2 + $0x2] sm:$0x3] }
0x10bb   :  { %3351 = vmatmul.mubr.msk.f32.vlgmr.msra.gmra.mrb[16].mxu0 %vm44_vm2, %v1497_v57  ;;  %2971 = vst.msk [vmem:[%s4326_s3 + $0xa] sm:$0x3] %vm18_vm0, %v1487_v58  ;;  %v1575_v22 = vld [vmem:[#allocation2 + $0x2] sm:$0x3] }
0x10bc   :  { %3628 = vmatpush3.bf16.msra.mxu0 %v3832_v5  ;;  %3372 = vmatprep.mubr.msk.f32.mxu0 %vm3782_vm1, %v3783_v4 }
0x10bd   :  { %3629 = vmatprep.subr.bf16.mxu0 %v3781_v0 }
0x10c0   :  { %3631 = vmatpush3.bf16.msra.mxu0 %v3841_v7 }
0x10c1   :  { %3638 = vmatprep.subr.bf16.mxu0 %v3781_v0 }
0x1186   :  { %v1355_v60 = vpop.f32.mrb[14].mxu0 }
0x1187   :  { %v1359_v61 = vadd.f32 %v1355_v60, %v1286_v59  ;;  %v3330_v62 = vpop.f32.mrb[15].mxu0  ;;  %v2980_v59 = vld [vmem:[%s4325_s0 + $0x16] sm:$0x3] }
0x1189   :  { %v1360_v63 = vmul.f32 %v1359_v61, %v3893_v28 }
0x118b   :  { %3741 = vtanh.f32 %v1360_v63 }
0x118e   :  { %v1567_v2 = vpop.f32.mrb[16].mxu0 }
0x118f   :  { %v1571_v3 = vadd.f32 %v2974_v1, %v1567_v2  ;;  %v3352_v6 = vpop.f32.mrb[17].mxu0 }
0x1191   :  { %1572 = vst [vmem:[#allocation3] sm:$0x3] %v1571_v3 }
0x1195   :  { %v3742_v8 = vpop.eup %3741 }
0x1196   :  { %v1362_v9 = vmul.f32 %v3742_v8, %v3893_v28 }
0x1198   :  { %v1363_v10 = vadd.f32 %v1362_v9, %v3896_v35  ;;  %v1807_v54 = vld [vmem:[#allocation3] sm:$0x3] }
0x119a   :  { %1366 = vrot.lane.b32.xlu1 %v1363_v10, %s3785_s30  ;;  %v1364_v14 = vmul.f32 %v1363_v10, %v1274_v52 }
0x120c   :  { %v1367_v11 = vpop.permute.xlu1 %1366 }
0x120d   :  { %v1369_v13 = vmul.f32 %v1367_v11, %v1363_v10 }
0x120f   :  { %1371 = vrot.lane.b32.xlu0 %v1369_v13, %s3786_s4 }
0x1281   :  { %v1372_v16 = vpop.permute.xlu0 %1371 }
0x1282   :  { %v1374_v17 = vadd.f32 %v1372_v16, %v1364_v14 }
0x1284   :  { %3743 = vtanh.f32 %v1374_v17 }
0x128e   :  { %v3744_v18 = vpop.eup %3743 }
0x128f   :  { %1377 = vrot.lane.b32.xlu1 %v3744_v18, %s3785_s30 }
0x1301   :  { %v1378_v19 = vpop.permute.xlu1 %1377 }
0x1302   :  { %v1380_v20 = vmul.f32 %v1378_v19, %v1363_v10 }
0x1304   :  { %1382 = vrot.lane.b32.xlu0 %v1380_v20, %s3786_s4 }
0x1376   :  { %v1383_v21 = vpop.permute.xlu0 %1382 }
0x1377   :  { %1385 = vst.msk [vmem:[#allocation2 + $0x4] sm:$0x3] %vm18_vm0, %v1383_v21  ;;  %3340 = vmatmul.mubr.msk.f32.vlgmr.msra.gmra.mrb[14].mxu1 %vm44_vm2, %v1383_v21 }
0x1378   :  { %3622 = vmatpush3.bf16.msra.mxu1 %v3832_v5  ;;  %3361 = vmatprep.mubr.msk.f32.mxu1 %vm3782_vm1, %v3783_v4 }
0x1379   :  { %3623 = vmatprep.subr.bf16.mxu1 %v3781_v0 }
0x137c   :  { %3625 = vmatpush3.bf16.msra.mxu1 %v3841_v7 }
0x137d   :  { %3632 = vmatprep.subr.bf16.mxu1 %v3781_v0 }
0x137e   :  { %v1653_v23 = vld [vmem:[#allocation2 + $0x4] sm:$0x3] }
0x137f   :  { %v1488_v24 = vld [vmem:[#allocation2 + $0x4] sm:$0x3]  ;;  %3362 = vmatmul.mubr.msk.f32.vlgmr.msra.gmra.mrb[16].mxu1 %vm44_vm2, %v1575_v22  ;;  %3373 = vmatmul.mubr.msk.f32.vlgmr.msra.gmra.mrb[18].mxu0 %vm44_vm2, %v1653_v23 }
0x1380   :  { %2972 = vst.msk [vmem:[%s4326_s3 + $0xc] sm:$0x3] %vm18_vm0, %v1488_v24  ;;  %3640 = vmatpush3.bf16.msra.mxu0 %v3862_v12  ;;  %3394 = vmatprep.mubr.msk.f32.mxu0 %vm3782_vm1, %v3783_v4 }
0x1381   :  { %3641 = vmatprep.subr.bf16.mxu0 %v3781_v0  ;;  %3634 = vmatpush3.bf16.msra.mxu1 %v3832_v5 }
0x1382   :  { %3635 = vmatprep.subr.bf16.mxu1 %v3781_v0  ;;  %3383 = vmatprep.mubr.msk.f32.mxu1 %vm3782_vm1, %v3783_v4 }
0x1384   :  { %3643 = vmatpush3.bf16.msra.mxu0 %v3873_v15 }
0x1385   :  { %3637 = vmatpush3.bf16.msra.mxu1 %v3841_v7  ;;  %3650 = vmatprep.subr.bf16.mxu0 %v3781_v0 }
0x1386   :  { %3644 = vmatprep.subr.bf16.mxu1 %v3781_v0 }
0x144a   :  { %v1455_v26 = vpop.f32.mrb[14].mxu1 }
0x144b   :  { %v1459_v27 = vadd.f32 %v1455_v26, %v1386_v25  ;;  %v3341_v29 = vpop.f32.mrb[15].mxu1 }
0x144d   :  { %v1460_v30 = vmul.f32 %v1459_v27, %v3893_v28 }
0x144f   :  { %3745 = vtanh.f32 %v1460_v30 }
0x1452   :  { %v1645_v33 = vpop.f32.mrb[16].mxu1  ;;  %v1723_v34 = vpop.f32.mrb[18].mxu0 }
0x1453   :  { %v1649_v36 = vadd.f32 %v2976_v31, %v1645_v33  ;;  %v3363_v37 = vpop.f32.mrb[17].mxu1  ;;  %v1727_v38 = vadd.f32 %v2978_v32, %v1723_v34  ;;  %v3374_v39 = vpop.f32.mrb[19].mxu0 }
0x1455   :  { %1650 = vst [vmem:[#allocation3 + $0x2] sm:$0x3] %v1649_v36  ;;  %1728 = vst [vmem:[#allocation3 + $0x4] sm:$0x3] %v1727_v38 }
0x1459   :  { %v3746_v40 = vpop.eup %3745 }
0x145a   :  { %v1462_v41 = vmul.f32 %v3746_v40, %v3893_v28 }
0x145c   :  { %v1463_v42 = vadd.f32 %v1462_v41, %v3896_v35  ;;  %v1907_v18 = vld [vmem:[#allocation3 + $0x2] sm:$0x3]  ;;  %v2007_v39 = vld [vmem:[#allocation3 + $0x4] sm:$0x3] }
0x145e   :  { %1466 = vrot.lane.b32.xlu1 %v1463_v42, %s3785_s30  ;;  %v1464_v45 = vmul.f32 %v1463_v42, %v1374_v17 }
0x14d0   :  { %v1467_v43 = vpop.permute.xlu1 %1466 }
0x14d1   :  { %v1469_v44 = vmul.f32 %v1467_v43, %v1463_v42 }
0x14d3   :  { %1471 = vrot.lane.b32.xlu0 %v1469_v44, %s3786_s4  ;;  %v2990_v44 = vld [vmem:[%s4325_s0 + $0x18] sm:$0x3] }
0x1545   :  { %v1472_v46 = vpop.permute.xlu0 %1471 }
0x1546   :  { %v1474_v47 = vadd.f32 %v1472_v46, %v1464_v45 }
0x1548   :  { %3747 = vtanh.f32 %v1474_v47 }
0x1552   :  { %v3748_v48 = vpop.eup %3747 }
0x1553   :  { %1477 = vrot.lane.b32.xlu1 %v3748_v48, %s3785_s30 }
0x15c5   :  { %v1478_v49 = vpop.permute.xlu1 %1477 }
0x15c6   :  { %v1480_v50 = vmul.f32 %v1478_v49, %v1463_v42 }
0x15c8   :  { %1482 = vrot.lane.b32.xlu0 %v1480_v50, %s3786_s4 }
0x163a   :  { %v1483_v51 = vpop.permute.xlu0 %1482 }
0x163b   :  { %1485 = vst.msk [vmem:[#allocation2 + $0x6] sm:$0x3] %vm18_vm0, %v1483_v51  ;;  %3395 = vmatmul.mubr.msk.f32.vlgmr.msra.gmra.mrb[20].mxu0 %vm44_vm2, %v1483_v51 }
0x163c   :  { %3652 = vmatpush3.bf16.msra.mxu0 %v3862_v12  ;;  %3416 = vmatprep.mubr.msk.f32.mxu0 %vm3782_vm1, %v3783_v4 }
0x163d   :  { %3653 = vmatprep.subr.bf16.mxu0 %v3781_v0 }
0x1640   :  { %3655 = vmatpush3.bf16.msra.mxu0 %v3873_v15 }
0x1641   :  { %3662 = vmatprep.subr.bf16.mxu0 %v3781_v0 }
0x1642   :  { %v1731_v52 = vld [vmem:[#allocation2 + $0x6] sm:$0x3] }
0x1643   :  { %v1489_v53 = vld [vmem:[#allocation2 + $0x6] sm:$0x3]  ;;  %3384 = vmatmul.mubr.msk.f32.vlgmr.msra.gmra.mrb[18].mxu1 %vm44_vm2, %v1731_v52 }
0x1644   :  { %2973 = vst.msk [vmem:[%s4326_s3 + $0xe] sm:$0x3] %vm18_vm0, %v1489_v53  ;;  %3646 = vmatpush3.bf16.msra.mxu1 %v3862_v12  ;;  %3405 = vmatprep.mubr.msk.f32.mxu1 %vm3782_vm1, %v3783_v4 }
0x1645   :  { %3647 = vmatprep.subr.bf16.mxu1 %v3781_v0 }
0x1648   :  { %3649 = vmatpush3.bf16.msra.mxu1 %v3873_v15 }
0x1649   :  { %3656 = vmatprep.subr.bf16.mxu1 %v3781_v0 }
0x170e   :  { %v1876_v55 = vpop.f32.mrb[20].mxu0 }
0x170f   :  { %v1880_v56 = vadd.f32 %v1876_v55, %v1807_v54  ;;  %v3396_v57 = vpop.f32.mrb[21].mxu0 }
0x1711   :  { %v1881_v58 = vmul.f32 %v1880_v56, %v3893_v28 }
0x1713   :  { %3749 = vtanh.f32 %v1881_v58 }
0x1716   :  { %v1801_v60 = vpop.f32.mrb[18].mxu1 }
0x1717   :  { %v1805_v61 = vadd.f32 %v2980_v59, %v1801_v60  ;;  %v3385_v62 = vpop.f32.mrb[19].mxu1 }
0x1719   :  { %1806 = vst [vmem:[#allocation3 + $0x6] sm:$0x3] %v1805_v61 }
0x171d   :  { %v3750_v63 = vpop.eup %3749 }
0x171e   :  { %v1883_v1 = vmul.f32 %v3750_v63, %v3893_v28 }
0x1720   :  { %v1884_v2 = vadd.f32 %v1883_v1, %v3896_v35  ;;  %v2107_v63 = vld [vmem:[#allocation3 + $0x6] sm:$0x3] }
0x1722   :  { %1887 = vrot.lane.b32.xlu1 %v1884_v2, %s3785_s30  ;;  %v1885_v8 = vmul.f32 %v1884_v2, %v1474_v47 }
0x1794   :  { %v1888_v3 = vpop.permute.xlu1 %1887 }
0x1795   :  { %v1890_v6 = vmul.f32 %v1888_v3, %v1884_v2 }
0x1797   :  { %1892 = vrot.lane.b32.xlu0 %v1890_v6, %s3786_s4 }
0x1809   :  { %v1893_v9 = vpop.permute.xlu0 %1892 }
0x180a   :  { %v1895_v10 = vadd.f32 %v1893_v9, %v1885_v8  ;;  %v2994_v8 = vld [vmem:[%s4325_s0 + $0x1c] sm:$0x3] }
0x180c   :  { %3751 = vtanh.f32 %v1895_v10 }
0x1816   :  { %v3752_v11 = vpop.eup %3751 }
0x1817   :  { %1898 = vrot.lane.b32.xlu1 %v3752_v11, %s3785_s30 }
0x1889   :  { %v1899_v13 = vpop.permute.xlu1 %1898 }
0x188a   :  { %v1901_v14 = vmul.f32 %v1899_v13, %v1884_v2 }
0x188c   :  { %1903 = vrot.lane.b32.xlu0 %v1901_v14, %s3786_s4 }
0x18fe   :  { %v1904_v16 = vpop.permute.xlu0 %1903 }
0x18ff   :  { %1906 = vst.msk [vmem:[#allocation2] sm:$0x3] %vm18_vm0, %v1904_v16  ;;  %3406 = vmatmul.mubr.msk.f32.vlgmr.msra.gmra.mrb[20].mxu1 %vm44_vm2, %v1904_v16 }
0x1900   :  { %3658 = vmatpush3.bf16.msra.mxu1 %v3862_v12  ;;  %3427 = vmatprep.mubr.msk.f32.mxu1 %vm3782_vm1, %v3783_v4 }
0x1901   :  { %3659 = vmatprep.subr.bf16.mxu1 %v3781_v0 }
0x1904   :  { %3661 = vmatpush3.bf16.msra.mxu1 %v3873_v15 }
0x1905   :  { %3668 = vmatprep.subr.bf16.mxu1 %v3781_v0 }
0x1906   :  { %v2207_v17 = vld [vmem:[#allocation2] sm:$0x3] }
0x1907   :  { %2986 = vst.msk [vmem:[%s4326_s3 + $0x10] sm:$0x3] %vm18_vm0, %v2207_v17  ;;  %v2218_v38 = vld [vmem:[#allocation2] sm:$0x3] }
0x19d2   :  { %v1976_v19 = vpop.f32.mrb[20].mxu1 }
0x19d3   :  { %v1980_v20 = vadd.f32 %v1976_v19, %v1907_v18  ;;  %v3407_v21 = vpop.f32.mrb[21].mxu1 }
0x19d5   :  { %v1981_v22 = vmul.f32 %v1980_v20, %v3893_v28 }
0x19d7   :  { %3753 = vtanh.f32 %v1981_v22 }
0x19e1   :  { %v3754_v23 = vpop.eup %3753 }
0x19e2   :  { %v1983_v24 = vmul.f32 %v3754_v23, %v3893_v28 }
0x19e4   :  { %v1984_v25 = vadd.f32 %v1983_v24, %v3896_v35 }
0x19e6   :  { %1987 = vrot.lane.b32.xlu1 %v1984_v25, %s3785_s30  ;;  %v1985_v29 = vmul.f32 %v1984_v25, %v1895_v10 }
0x1a58   :  { %v1988_v26 = vpop.permute.xlu1 %1987 }
0x1a59   :  { %v1990_v27 = vmul.f32 %v1988_v26, %v1984_v25 }
0x1a5b   :  { %1992 = vrot.lane.b32.xlu0 %v1990_v27, %s3786_s4 }
0x1acd   :  { %v1993_v30 = vpop.permute.xlu0 %1992 }
0x1ace   :  { %v1995_v31 = vadd.f32 %v1993_v30, %v1985_v29 }
0x1ad0   :  { %3755 = vtanh.f32 %v1995_v31 }
0x1ada   :  { %v3756_v32 = vpop.eup %3755 }
0x1adb   :  { %1998 = vrot.lane.b32.xlu1 %v3756_v32, %s3785_s30 }
0x1b4d   :  { %v1999_v33 = vpop.permute.xlu1 %1998 }
0x1b4e   :  { %v2001_v34 = vmul.f32 %v1999_v33, %v1984_v25 }
0x1b50   :  { %2003 = vrot.lane.b32.xlu0 %v2001_v34, %s3786_s4 }
0x1bc2   :  { %v2004_v36 = vpop.permute.xlu0 %2003 }
0x1bc3   :  { %2006 = vst.msk [vmem:[#allocation2 + $0x2] sm:$0x3] %vm18_vm0, %v2004_v36  ;;  %3417 = vmatmul.mubr.msk.f32.vlgmr.msra.gmra.mrb[22].mxu0 %vm44_vm2, %v2004_v36 }
0x1bc4   :  { %3664 = vmatpush3.bf16.msra.mxu0 %v3832_v5  ;;  %3438 = vmatprep.mubr.msk.f32.mxu0 %vm3782_vm1, %v3783_v4 }
0x1bc5   :  { %3665 = vmatprep.subr.bf16.mxu0 %v3781_v0 }
0x1bc8   :  { %3667 = vmatpush3.bf16.msra.mxu0 %v3841_v7 }
0x1bc9   :  { %3674 = vmatprep.subr.bf16.mxu0 %v3781_v0 }
0x1bca   :  { %v2208_v37 = vld [vmem:[#allocation2 + $0x2] sm:$0x3] }
0x1bcb   :  { %2987 = vst.msk [vmem:[%s4326_s3 + $0x12] sm:$0x3] %vm18_vm0, %v2208_v37  ;;  %3439 = vmatmul.mubr.msk.f32.vlgmr.msra.gmra.mrb[24].mxu0 %vm44_vm2, %v2218_v38  ;;  %v2296_v61 = vld [vmem:[#allocation2 + $0x2] sm:$0x3]  ;;  %v2996_v37 = vld [vmem:[%s4325_s0 + $0x1e] sm:$0x3] }
0x1bcc   :  { %3676 = vmatpush3.bf16.msra.mxu0 %v3832_v5  ;;  %3460 = vmatprep.mubr.msk.f32.mxu0 %vm3782_vm1, %v3783_v4 }
0x1bcd   :  { %3677 = vmatprep.subr.bf16.mxu0 %v3781_v0 }
0x1bd0   :  { %3679 = vmatpush3.bf16.msra.mxu0 %v3841_v7 }
0x1bd1   :  { %3686 = vmatprep.subr.bf16.mxu0 %v3781_v0 }
0x1c96   :  { %v2076_v40 = vpop.f32.mrb[22].mxu0 }
0x1c97   :  { %v2080_v41 = vadd.f32 %v2076_v40, %v2007_v39  ;;  %v3418_v42 = vpop.f32.mrb[23].mxu0 }
0x1c99   :  { %v2081_v43 = vmul.f32 %v2080_v41, %v3893_v28 }
0x1c9b   :  { %3757 = vtanh.f32 %v2081_v43 }
0x1c9e   :  { %v2288_v45 = vpop.f32.mrb[24].mxu0 }
0x1c9f   :  { %v2292_v46 = vadd.f32 %v2990_v44, %v2288_v45  ;;  %v3440_v47 = vpop.f32.mrb[25].mxu0 }
0x1ca1   :  { %2293 = vst [vmem:[#allocation3] sm:$0x3] %v2292_v46 }
0x1ca5   :  { %v3758_v48 = vpop.eup %3757 }
0x1ca6   :  { %v2083_v49 = vmul.f32 %v3758_v48, %v3893_v28 }
0x1ca8   :  { %v2084_v50 = vadd.f32 %v2083_v49, %v3896_v35 }
0x1caa   :  { %2087 = vrot.lane.b32.xlu1 %v2084_v50, %s3785_s30  ;;  %v2085_v53 = vmul.f32 %v2084_v50, %v1995_v31  ;;  %v2528_v31 = vld [vmem:[#allocation3] sm:$0x3] }
0x1d1c   :  { %v2088_v51 = vpop.permute.xlu1 %2087 }
0x1d1d   :  { %v2090_v52 = vmul.f32 %v2088_v51, %v2084_v50 }
0x1d1f   :  { %2092 = vrot.lane.b32.xlu0 %v2090_v52, %s3786_s4 }
0x1d91   :  { %v2093_v54 = vpop.permute.xlu0 %2092 }
0x1d92   :  { %v2095_v55 = vadd.f32 %v2093_v54, %v2085_v53 }
0x1d94   :  { %3759 = vtanh.f32 %v2095_v55 }
0x1d9e   :  { %v3760_v56 = vpop.eup %3759 }
0x1d9f   :  { %2098 = vrot.lane.b32.xlu1 %v3760_v56, %s3785_s30 }
0x1e11   :  { %v2099_v57 = vpop.permute.xlu1 %2098 }
0x1e12   :  { %v2101_v58 = vmul.f32 %v2099_v57, %v2084_v50 }
0x1e14   :  { %2103 = vrot.lane.b32.xlu0 %v2101_v58, %s3786_s4 }
0x1e86   :  { %v2104_v59 = vpop.permute.xlu0 %2103 }
0x1e87   :  { %2106 = vst.msk [vmem:[#allocation2 + $0x4] sm:$0x3] %vm18_vm0, %v2104_v59  ;;  %3428 = vmatmul.mubr.msk.f32.vlgmr.msra.gmra.mrb[22].mxu1 %vm44_vm2, %v2104_v59 }
0x1e88   :  { %3670 = vmatpush3.bf16.msra.mxu1 %v3832_v5  ;;  %3449 = vmatprep.mubr.msk.f32.mxu1 %vm3782_vm1, %v3783_v4 }
0x1e89   :  { %3671 = vmatprep.subr.bf16.mxu1 %v3781_v0 }
0x1e8c   :  { %3673 = vmatpush3.bf16.msra.mxu1 %v3841_v7 }
0x1e8d   :  { %3680 = vmatprep.subr.bf16.mxu1 %v3781_v0 }
0x1e8e   :  { %v2209_v60 = vld [vmem:[#allocation2 + $0x4] sm:$0x3] }
0x1e8f   :  { %v2374_v62 = vld [vmem:[#allocation2 + $0x4] sm:$0x3]  ;;  %2988 = vst.msk [vmem:[%s4326_s3 + $0x14] sm:$0x3] %vm18_vm0, %v2209_v60  ;;  %3450 = vmatmul.mubr.msk.f32.vlgmr.msra.gmra.mrb[24].mxu1 %vm44_vm2, %v2296_v61 }
0x1e90   :  { %3461 = vmatmul.mubr.msk.f32.vlgmr.msra.gmra.mrb[26].mxu0 %vm44_vm2, %v2374_v62  ;;  %3682 = vmatpush3.bf16.msra.mxu1 %v3832_v5  ;;  %v2992_v5 = vld [vmem:[%s4325_s0 + $0x1a] sm:$0x3] }
0x1e91   :  { %3688 = vmatpush3.bf16.msra.mxu0 %v3862_v12  ;;  %3482 = vmatprep.mubr.msk.f32.mxu0 %vm3782_vm1, %v3783_v4 }
0x1e92   :  { %3689 = vmatprep.subr.bf16.mxu0 %v3781_v0  ;;  %3683 = vmatprep.subr.bf16.mxu1 %v3781_v0 }
0x1e93   :  { %3471 = vmatprep.mubr.msk.f32.mxu1 %vm3782_vm1, %v3783_v4 }
0x1e94   :  { %3685 = vmatpush3.bf16.msra.mxu1 %v3841_v7 }
0x1e95   :  { %3691 = vmatpush3.bf16.msra.mxu0 %v3873_v15  ;;  %3692 = vmatprep.subr.bf16.mxu1 %v3781_v0 }
0x1e96   :  { %3698 = vmatprep.subr.bf16.mxu0 %v3781_v0 }
0x1f5a   :  { %v2176_v1 = vpop.f32.mrb[22].mxu1 }
0x1f5b   :  { %v2180_v2 = vadd.f32 %v2176_v1, %v2107_v63  ;;  %v3429_v3 = vpop.f32.mrb[23].mxu1 }
0x1f5d   :  { %v2181_v6 = vmul.f32 %v2180_v2, %v3893_v28 }
0x1f5f   :  { %3761 = vtanh.f32 %v2181_v6 }
0x1f62   :  { %v2366_v7 = vpop.f32.mrb[24].mxu1 }
0x1f63   :  { %v2444_v9 = vpop.f32.mrb[26].mxu0  ;;  %v2370_v10 = vadd.f32 %v2992_v5, %v2366_v7  ;;  %v3451_v11 = vpop.f32.mrb[25].mxu1 }
0x1f64   :  { %v2448_v13 = vadd.f32 %v2994_v8, %v2444_v9  ;;  %v3462_v14 = vpop.f32.mrb[27].mxu0 }
0x1f65   :  { %2371 = vst [vmem:[#allocation3 + $0x2] sm:$0x3] %v2370_v10 }
0x1f66   :  { %2449 = vst [vmem:[#allocation3 + $0x4] sm:$0x3] %v2448_v13 }
0x1f69   :  { %v3762_v16 = vpop.eup %3761 }
0x1f6a   :  { %v2183_v17 = vmul.f32 %v3762_v16, %v3893_v28 }
0x1f6c   :  { %v2184_v18 = vadd.f32 %v2183_v17, %v3896_v35  ;;  %v2628_v54 = vld [vmem:[#allocation3 + $0x2] sm:$0x3] }
0x1f6d   :  { %v2728_v5 = vld [vmem:[#allocation3 + $0x4] sm:$0x3] }
0x1f6e   :  { %2187 = vrot.lane.b32.xlu1 %v2184_v18, %s3785_s30  ;;  %v2185_v21 = vmul.f32 %v2184_v18, %v2095_v55 }
0x1fe0   :  { %v2188_v19 = vpop.permute.xlu1 %2187 }
0x1fe1   :  { %v2190_v20 = vmul.f32 %v2188_v19, %v2184_v18 }
0x1fe3   :  { %2192 = vrot.lane.b32.xlu0 %v2190_v20, %s3786_s4 }
0x2055   :  { %v2193_v22 = vpop.permute.xlu0 %2192 }
0x2056   :  { %v2195_v23 = vadd.f32 %v2193_v22, %v2185_v21 }
0x2058   :  { %3763 = vtanh.f32 %v2195_v23 }
0x2062   :  { %v3764_v24 = vpop.eup %3763 }
0x2063   :  { %2198 = vrot.lane.b32.xlu1 %v3764_v24, %s3785_s30 }
0x20d5   :  { %v2199_v25 = vpop.permute.xlu1 %2198 }
0x20d6   :  { %v2201_v26 = vmul.f32 %v2199_v25, %v2184_v18 }
0x20d8   :  { %2203 = vrot.lane.b32.xlu0 %v2201_v26, %s3786_s4 }
0x214a   :  { %v2204_v27 = vpop.permute.xlu0 %2203 }
0x214b   :  { %2206 = vst.msk [vmem:[#allocation2 + $0x6] sm:$0x3] %vm18_vm0, %v2204_v27  ;;  %3483 = vmatmul.mubr.msk.f32.vlgmr.msra.gmra.mrb[28].mxu0 %vm44_vm2, %v2204_v27 }
0x214c   :  { %3700 = vmatpush3.bf16.msra.mxu0 %v3862_v12  ;;  %3504 = vmatprep.mubr.msk.f32.mxu0 %vm3782_vm1, %v3783_v4 }
0x214d   :  { %3701 = vmatprep.subr.bf16.mxu0 %v3781_v0 }
0x2150   :  { %3703 = vmatpush3.bf16.msra.mxu0 %v3873_v15 }
0x2152   :  { %v2210_v29 = vld [vmem:[#allocation2 + $0x6] sm:$0x3] }
0x2153   :  { %v2452_v30 = vld [vmem:[#allocation2 + $0x6] sm:$0x3]  ;;  %2989 = vst.msk [vmem:[%s4326_s3 + $0x16] sm:$0x3] %vm18_vm0, %v2210_v29 }
0x2154   :  { %3472 = vmatmul.mubr.msk.f32.vlgmr.msra.gmra.mrb[26].mxu1 %vm44_vm2, %v2452_v30 }
0x2155   :  { %3694 = vmatpush3.bf16.msra.mxu1 %v3862_v12  ;;  %3493 = vmatprep.mubr.msk.f32.mxu1 %vm3782_vm1, %v3783_v4 }
0x2156   :  { %3695 = vmatprep.subr.bf16.mxu1 %v3781_v0 }
0x2159   :  { %3697 = vmatpush3.bf16.msra.mxu1 %v3873_v15 }
0x215a   :  { %3704 = vmatprep.subr.bf16.mxu1 %v3781_v0 }
0x221e   :  { %v2597_v32 = vpop.f32.mrb[28].mxu0 }
0x221f   :  { %v2601_v33 = vadd.f32 %v2597_v32, %v2528_v31  ;;  %v3484_v34 = vpop.f32.mrb[29].mxu0 }
0x2221   :  { %v2602_v36 = vmul.f32 %v2601_v33, %v3893_v28 }
0x2223   :  { %3765 = vtanh.f32 %v2602_v36 }
0x2227   :  { %v2522_v38 = vpop.f32.mrb[26].mxu1 }
0x2228   :  { %v2526_v39 = vadd.f32 %v2996_v37, %v2522_v38  ;;  %v3473_v40 = vpop.f32.mrb[27].mxu1 }
0x222a   :  { %2527 = vst [vmem:[#allocation3 + $0x6] sm:$0x3] %v2526_v39 }
0x222d   :  { %v3766_v41 = vpop.eup %3765 }
0x222e   :  { %v2604_v42 = vmul.f32 %v3766_v41, %v3893_v28 }
0x2230   :  { %v2605_v43 = vadd.f32 %v2604_v42, %v3896_v35 }
0x2231   :  { %v2828_v26 = vld [vmem:[#allocation3 + $0x6] sm:$0x3] }
0x2232   :  { %2608 = vrot.lane.b32.xlu1 %v2605_v43, %s3785_s30  ;;  %v2606_v46 = vmul.f32 %v2605_v43, %v2195_v23 }
0x22a4   :  { %v2609_v44 = vpop.permute.xlu1 %2608 }
0x22a5   :  { %v2611_v45 = vmul.f32 %v2609_v44, %v2605_v43 }
0x22a7   :  { %2613 = vrot.lane.b32.xlu0 %v2611_v45, %s3786_s4 }
0x2319   :  { %v2614_v47 = vpop.permute.xlu0 %2613 }
0x231a   :  { %v2616_v48 = vadd.f32 %v2614_v47, %v2606_v46 }
0x231c   :  { %3767 = vtanh.f32 %v2616_v48 }
0x2326   :  { %v3768_v49 = vpop.eup %3767 }
0x2327   :  { %2619 = vrot.lane.b32.xlu1 %v3768_v49, %s3785_s30 }
0x2399   :  { %v2620_v50 = vpop.permute.xlu1 %2619 }
0x239a   :  { %v2622_v51 = vmul.f32 %v2620_v50, %v2605_v43 }
0x239c   :  { %2624 = vrot.lane.b32.xlu0 %v2622_v51, %s3786_s4 }
0x240e   :  { %v2625_v52 = vpop.permute.xlu0 %2624 }
0x240f   :  { %2627 = vst.msk [vmem:[#allocation2] sm:$0x3] %vm18_vm0, %v2625_v52  ;;  %3494 = vmatmul.mubr.msk.f32.vlgmr.msra.gmra.mrb[28].mxu1 %vm44_vm2, %v2625_v52 }
0x2410   :  { %3706 = vmatpush3.bf16.msra.mxu1 %v3862_v12  ;;  %3515 = vmatprep.mubr.msk.f32.mxu1 %vm3782_vm1, %v3783_v4 }
0x2411   :  { %3707 = vmatprep.subr.bf16.mxu1 %v3781_v0 }
0x2414   :  { %3709 = vmatpush3.bf16.msra.mxu1 %v3873_v15 }
0x2416   :  { %v2928_v53 = vld [vmem:[#allocation2] sm:$0x3] }
0x2417   :  { %3002 = vst.msk [vmem:[%s4326_s3 + $0x18] sm:$0x3] %vm18_vm0, %v2928_v53 }
0x24e2   :  { %v2697_v55 = vpop.f32.mrb[28].mxu1 }
0x24e3   :  { %v2701_v56 = vadd.f32 %v2697_v55, %v2628_v54  ;;  %v3495_v57 = vpop.f32.mrb[29].mxu1 }
0x24e5   :  { %v2702_v58 = vmul.f32 %v2701_v56, %v3893_v28 }
0x24e7   :  { %3769 = vtanh.f32 %v2702_v58 }
0x24f1   :  { %v3770_v12 = vpop.eup %3769 }
0x24f2   :  { %v2704_v4 = vmul.f32 %v3770_v12, %v3893_v28 }
0x24f4   :  { %v2705_v0 = vadd.f32 %v2704_v4, %v3896_v35 }
0x24f6   :  { %2708 = vrot.lane.b32.xlu1 %v2705_v0, %s3785_s30  ;;  %v2706_v60 = vmul.f32 %v2705_v0, %v2616_v48 }
0x2568   :  { %v2709_v15 = vpop.permute.xlu1 %2708 }
0x2569   :  { %v2711_v59 = vmul.f32 %v2709_v15, %v2705_v0 }
0x256b   :  { %2713 = vrot.lane.b32.xlu0 %v2711_v59, %s3786_s4 }
0x25dd   :  { %v2714_v61 = vpop.permute.xlu0 %2713 }
0x25de   :  { %v2716_v62 = vadd.f32 %v2714_v61, %v2706_v60 }
0x25e0   :  { %3771 = vtanh.f32 %v2716_v62 }
0x25ea   :  { %v3772_v63 = vpop.eup %3771 }
0x25eb   :  { %2719 = vrot.lane.b32.xlu1 %v3772_v63, %s3785_s30 }
0x265d   :  { %v2720_v1 = vpop.permute.xlu1 %2719 }
0x265e   :  { %v2722_v2 = vmul.f32 %v2720_v1, %v2705_v0 }
0x2660   :  { %2724 = vrot.lane.b32.xlu0 %v2722_v2, %s3786_s4 }
0x26d2   :  { %v2725_v3 = vpop.permute.xlu0 %2724 }
0x26d3   :  { %2727 = vst.msk [vmem:[#allocation2 + $0x2] sm:$0x3] %vm18_vm0, %v2725_v3  ;;  %3505 = vmatmul.mubr.msk.f32.vlgmr.msra.gmra.mrb[30].mxu0 %vm44_vm2, %v2725_v3 }
0x26da   :  { %v2929_v6 = vld [vmem:[#allocation2 + $0x2] sm:$0x3] }
0x26db   :  { %3003 = vst.msk [vmem:[%s4326_s3 + $0x1a] sm:$0x3] %vm18_vm0, %v2929_v6 }
0x27a6   :  { %v2797_v8 = vpop.f32.mrb[30].mxu0 }
0x27a7   :  { %v2801_v7 = vadd.f32 %v2797_v8, %v2728_v5  ;;  %v3506_v9 = vpop.f32.mrb[31].mxu0 }
0x27a9   :  { %v2802_v10 = vmul.f32 %v2801_v7, %v3893_v28 }
0x27ab   :  { %3773 = vtanh.f32 %v2802_v10 }
0x27b5   :  { %v3774_v11 = vpop.eup %3773 }
0x27b6   :  { %v2804_v13 = vmul.f32 %v3774_v11, %v3893_v28 }
0x27b8   :  { %v2805_v14 = vadd.f32 %v2804_v13, %v3896_v35 }
0x27ba   :  { %2808 = vrot.lane.b32.xlu1 %v2805_v14, %s3785_s30  ;;  %v2806_v18 = vmul.f32 %v2805_v14, %v2716_v62 }
0x282c   :  { %v2809_v16 = vpop.permute.xlu1 %2808 }
0x282d   :  { %v2811_v17 = vmul.f32 %v2809_v16, %v2805_v14 }
0x282f   :  { %2813 = vrot.lane.b32.xlu0 %v2811_v17, %s3786_s4 }
0x28a1   :  { %v2814_v19 = vpop.permute.xlu0 %2813 }
0x28a2   :  { %v2816_v20 = vadd.f32 %v2814_v19, %v2806_v18 }
0x28a4   :  { %3775 = vtanh.f32 %v2816_v20 }
0x28ae   :  { %v3776_v21 = vpop.eup %3775 }
0x28af   :  { %2819 = vrot.lane.b32.xlu1 %v3776_v21, %s3785_s30 }
0x2921   :  { %v2820_v22 = vpop.permute.xlu1 %2819 }
0x2922   :  { %v2822_v23 = vmul.f32 %v2820_v22, %v2805_v14 }
0x2924   :  { %2824 = vrot.lane.b32.xlu0 %v2822_v23, %s3786_s4 }
0x2996   :  { %v2825_v24 = vpop.permute.xlu0 %2824 }
0x2997   :  { %2827 = vst.msk [vmem:[#allocation2 + $0x4] sm:$0x3] %vm18_vm0, %v2825_v24  ;;  %3516 = vmatmul.mubr.msk.f32.vlgmr.msra.gmra.mrb[30].mxu1 %vm44_vm2, %v2825_v24 }
0x299e   :  { %v2930_v25 = vld [vmem:[#allocation2 + $0x4] sm:$0x3] }
0x299f   :  { %3004 = vst.msk [vmem:[%s4326_s3 + $0x1c] sm:$0x3] %vm18_vm0, %v2930_v25 }
0x2a6a   :  { %v2897_v27 = vpop.f32.mrb[30].mxu1 }
0x2a6b   :  { %v2901_v29 = vadd.f32 %v2897_v27, %v2828_v26  ;;  %v3517_v30 = vpop.f32.mrb[31].mxu1 }
0x2a6d   :  { %v2902_v31 = vmul.f32 %v2901_v29, %v3893_v28 }
0x2a6f   :  { %3777 = vtanh.f32 %v2902_v31 }
0x2a79   :  { %v3778_v32 = vpop.eup %3777 }
0x2a7a   :  { %v2904_v33 = vmul.f32 %v3778_v32, %v3893_v28 }
0x2a7c   :  { %v2905_v34 = vadd.f32 %v2904_v33, %v3896_v35 }
0x2a7e   :  { %2908 = vrot.lane.b32.xlu1 %v2905_v34, %s3785_s30  ;;  %v2906_v38 = vmul.f32 %v2905_v34, %v2816_v20 }
0x2af0   :  { %v2909_v36 = vpop.permute.xlu1 %2908 }
0x2af1   :  { %v2911_v37 = vmul.f32 %v2909_v36, %v2905_v34 }
0x2af3   :  { %2913 = vrot.lane.b32.xlu0 %v2911_v37, %s3786_s4 }
0x2b65   :  { %v2914_v39 = vpop.permute.xlu0 %2913 }
0x2b66   :  { %v2916_v40 = vadd.f32 %v2914_v39, %v2906_v38 }
0x2b68   :  { %3779 = vtanh.f32 %v2916_v40 }
0x2b72   :  { %v3780_v41 = vpop.eup %3779 }
0x2b73   :  { %2919 = vrot.lane.b32.xlu1 %v3780_v41, %s3785_s30 }
0x2b77   :  { %2939 = vrot.lane.b32.xlu1 %v2916_v40, %s3787_s8 }
0x2be5   :  { %v2920_v42 = vpop.permute.xlu1 %2919 }
0x2be6   :  { %v2922_v43 = vmul.f32 %v2920_v42, %v2905_v34 }
0x2be8   :  { %2924 = vrot.lane.b32.xlu0 %v2922_v43, %s3786_s4 }
0x2be9   :  { %v2940_v28 = vpop.permute.xlu1 %2939 }
0x2bea   :  { %2942 = vst.msk [vmem:[#allocation5] sm:$0x3] %vm18_vm0, %v2940_v28 }
0x2c5a   :  { %v2925_v35 = vpop.permute.xlu0 %2924 }
0x2c5b   :  { %2927 = vst.msk [vmem:[#allocation2 + $0x6] sm:$0x3] %vm18_vm0, %v2925_v35  ;;  %2937 = vst.msk [vmem:[#allocation4] sm:$0x3] %vm18_vm0, %v2925_v35 }
0x2c62   :  { %v2931_v44 = vld [vmem:[#allocation2 + $0x6] sm:$0x3] }
0x2c63   :  { %3005 = vst.msk [vmem:[%s4326_s3 + $0x1e] sm:$0x3] %vm18_vm0, %v2931_v44 }

</bundles_post_ra>
